<compile_context>
chip_gen: v7x
topology: tpu7x:2x2x1
jax: 0.10.0
libtpu: 0.0.40
codegen_flags: <defaults>
</compile_context>

<pallas_src>
import jax
import jax.numpy as jnp
from jax.experimental import pallas as pl
from jax.experimental.pallas import tpu as pltpu


def _gru_fused_kernel(x_ref, wih_ref, whh_ref, bcomb_ref, bhn_ref, out_ref, gi_ref):
    """x_ref: (T, Bt, D) time-major input tile.  out_ref: (Bt, H) final hidden state."""
    T, B, D = x_ref.shape
    H = whh_ref.shape[0]
    mm_dtype = wih_ref.dtype  # bf16 by default (MXU-native); f32 for exact parity

    # --- Batched, non-recurrent input projection: one big MXU matmul, streamed
    #     directly into VMEM scratch (never a long-lived register value). ---
    x_flat = x_ref[...].reshape(T * B, D).astype(mm_dtype)
    gi_ref[...] = (
        jnp.dot(x_flat, wih_ref[...], preferred_element_type=jnp.float32)
        + bcomb_ref[...]                      # folded b_ih (+ b_hh for r,z), f32
    )                                         # (T*B, 3H) f32 in VMEM

    # Hoist the (1,H)->(B,H) broadcast out of the loop (no CSE of broadcast_in_dim).
    b_hn = jnp.broadcast_to(bhn_ref[...], (B, H))

    def step_math(gi_t, h):
        # Recurrent matmul: read W_hh from VMEM at the use site (streamed RHS).
        gh = jnp.dot(h.astype(mm_dtype), whh_ref[...],
                     preferred_element_type=jnp.float32)                   # (B, 3H)
        r = jax.nn.sigmoid(gi_t[:, 0:H] + gh[:, 0:H])
        z = jax.nn.sigmoid(gi_t[:, H:2 * H] + gh[:, H:2 * H])
        n = jnp.tanh(gi_t[:, 2 * H:3 * H] + r * (gh[:, 2 * H:3 * H] + b_hn))
        return n + z * (h - n)                # == (1-z)*n + z*h, one fewer VPU op

    h = jnp.zeros((B, H), jnp.float32)
    if T <= 16:
        # Small static T: full unroll keeps LLO scheduling visibility.
        for t in range(T):
            gi_t = gi_ref[t * B:(t + 1) * B, :]          # static, sublane-aligned slice
            h = step_math(gi_t, h)
    else:
        # Large T: bound live ranges with a real loop reading gi from VMEM scratch.
        def body(t, h):
            start = t * B
            if B % 8 == 0:
                start = pl.multiple_of(start, 8)
            gi_t = gi_ref[pl.ds(start, B), :]
            return step_math(gi_t, h)
        h = jax.lax.fori_loop(0, T, body, h, unroll=2)

    out_ref[...] = h.astype(out_ref.dtype)


def prepare_params(params, matmul_dtype=jnp.bfloat16):
    """One-time parameter preprocessing (do NOT redo this every forward call).

    * Folds b_ih (all gates) + the r/z slices of b_hh into one bias added after the
      batched input projection; only b_hh[:, 2H:3H] (inside the r*(...) term) stays.
    * Casts the matmul weights to `matmul_dtype` (bf16 default: MXU-native on
      v5e/v6e/v7x and halves weight HBM->VMEM bytes).  Biases stay f32.
    * This is also where a PyTorch state_dict's (3H, D) weights would be transposed
      to the (D, 3H) / (H, 3H) layout the kernel consumes.
    """
    w_ih, w_hh, b_ih, b_hh = params            # (D,3H), (H,3H), (1,3H), (1,3H)
    H = w_hh.shape[0]
    b_comb = b_ih + jnp.concatenate(
        [b_hh[:, :2 * H], jnp.zeros((1, H), b_hh.dtype)], axis=1)          # (1, 3H)
    b_hn = b_hh[:, 2 * H:3 * H]                                            # (1, H)
    return (w_ih.astype(matmul_dtype), w_hh.astype(matmul_dtype),
            b_comb.astype(jnp.float32), b_hn.astype(jnp.float32))


def _pick_batch_tile(B, requested):
    if requested is not None and B % requested == 0 and B // requested >= 2:
        return requested
    return B


def user_encoder_forward(clicked_news_vecs, prepared_params, clicked_news_len=None,
                         *, batch_tile=256):
    """clicked_news_vecs: (B, T, D) float32.  Returns user_vector (B, H)."""
    del clicked_news_len  # unused, as in the reference forward
    w_ih, w_hh, b_comb, b_hn = prepared_params   # (D,3H), (H,3H), (1,3H), (1,H)
    B, T, D = clicked_news_vecs.shape
    H = w_hh.shape[0]

    if T == 0:  # zero-length history -> final state is the zero initial hidden state
        return jnp.zeros((B, H), clicked_news_vecs.dtype)

    # TODO(synk): fold this (B,T,D)->(T,B,D) transpose into the kernel (in-kernel
    # sublane permutation or grid-level DMA) to remove the extra XLA op and the
    # extra HBM pass over x at production B*T.
    x_tmajor = jnp.transpose(clicked_news_vecs, (1, 0, 2))                 # (T, B, D)

    # Batch tiling: at production B this shards independent users across a
    # "parallel" grid axis (2nd TensorCore on v7x, MXU-row fill on v6e/v7x).
    # At small B it degenerates to a single grid step.
    bt = _pick_batch_tile(B, batch_tile)
    n_b = B // bt

    grid_spec = pltpu.PrefetchScalarGridSpec(
        num_scalar_prefetch=0,
        grid=(n_b,),
        in_specs=[
            pl.BlockSpec((T, bt, D), lambda i: (0, i, 0)),     # x, per-batch tile
            pl.BlockSpec((D, 3 * H), lambda i: (0, 0)),        # W_ih (resident)
            pl.BlockSpec((H, 3 * H), lambda i: (0, 0)),        # W_hh (resident)
            pl.BlockSpec((1, 3 * H), lambda i: (0, 0)),        # folded bias
            pl.BlockSpec((1, H), lambda i: (0, 0)),            # b_hh n-gate slice
        ],
        out_specs=pl.BlockSpec((bt, H), lambda i: (i, 0)),
        scratch_shapes=[pltpu.VMEM((T * bt, 3 * H), jnp.float32)],  # staged gi
    )
    return pl.pallas_call(
        _gru_fused_kernel,
        out_shape=jax.ShapeDtypeStruct((B, H), clicked_news_vecs.dtype),
        grid_spec=grid_spec,
        compiler_params=pltpu.CompilerParams(dimension_semantics=("parallel",)),
    )(x_tmajor, w_ih, w_hh, b_comb, b_hn)


def _reference_gru(x, params):
    """Pure-JAX reference (PyTorch nn.GRU semantics, zero init hidden), f32."""
    w_ih, w_hh, b_ih, b_hh = params
    B, T, D = x.shape
    H = w_hh.shape[0]

    def step(h, x_t):
        gi = x_t @ w_ih + b_ih
        gh = h @ w_hh + b_hh
        i_r, i_z, i_n = gi[:, :H], gi[:, H:2 * H], gi[:, 2 * H:]
        h_r, h_z, h_n = gh[:, :H], gh[:, H:2 * H], gh[:, 2 * H:]
        r = jax.nn.sigmoid(i_r + h_r)
        z = jax.nn.sigmoid(i_z + h_z)
        n = jnp.tanh(i_n + r * h_n)
        return (1.0 - z) * n + z * h, None

    h0 = jnp.zeros((B, H), jnp.float32)
    h_final, _ = jax.lax.scan(step, h0, jnp.transpose(x, (1, 0, 2)))
    return h_final


def init_params(key, D, H):
    """Deterministic PyTorch-style init: U(-1/sqrt(H), 1/sqrt(H)), kernel layout."""
    k1, k2, k3, k4 = jax.random.split(key, 4)
    bound = 1.0 / jnp.sqrt(jnp.float32(H))
    w_ih = jax.random.uniform(k1, (D, 3 * H), jnp.float32, -bound, bound)
    w_hh = jax.random.uniform(k2, (H, 3 * H), jnp.float32, -bound, bound)
    b_ih = jax.random.uniform(k3, (1, 3 * H), jnp.float32, -bound, bound)
    b_hh = jax.random.uniform(k4, (1, 3 * H), jnp.float32, -bound, bound)
    return (w_ih, w_hh, b_ih, b_hh)


if __name__ == "__main__":
    # Small, tile-aligned shapes consistent with the module (news_embedding_dim -> D = H).
    # (A production D=400 would be lane-padded to a multiple of 128.)
    B, T, D = 8, 8, 128
    H = D

    key = jax.random.PRNGKey(0)
    k_x, k_p = jax.random.split(key)
    clicked_news_vecs = jax.random.normal(k_x, (B, T, D), jnp.float32)
    params = init_params(k_p, D, H)

    ref = _reference_gru(clicked_news_vecs, params)

    # Exact-parity check: f32 matmul path.
    prep_f32 = prepare_params(params, matmul_dtype=jnp.float32)
    out_f32 = jax.block_until_ready(user_encoder_forward(clicked_news_vecs, prep_f32))
    assert out_f32.shape == (B, H)
    assert jnp.allclose(out_f32, ref, atol=2e-5, rtol=2e-5)

    # Performance-default path: bf16 matmul operands, f32 accumulation/elementwise.
    prep_bf16 = prepare_params(params)  # bf16 default
    out_bf16 = jax.block_until_ready(user_encoder_forward(clicked_news_vecs, prep_bf16))
    assert out_bf16.shape == (B, H)
    assert jnp.allclose(out_bf16, ref, atol=5e-2, rtol=5e-2)

    print("KERNEL_OK")
</pallas_src>

<mosaic_0001>
module attributes {stable_mosaic.version = 11 : i64} {
  func.func @_gru_fused_kernel(%arg0: i32, %arg1: memref<8x8x128xf32, #tpu.memory_space<vmem>>, %arg2: memref<128x384xf32, #tpu.memory_space<vmem>>, %arg3: memref<128x384xf32, #tpu.memory_space<vmem>>, %arg4: memref<1x384xf32, #tpu.memory_space<vmem>>, %arg5: memref<1x128xf32, #tpu.memory_space<vmem>>, %arg6: memref<8x128xf32, #tpu.memory_space<vmem>>, %arg7: memref<64x384xf32, #tpu.memory_space<vmem>>) attributes {dimension_semantics = [#tpu.dimension_semantics<parallel>], iteration_bounds = array<i64: 1>, scalar_prefetch = 0 : i64, scratch_operands = 1 : i64, tpu.core_type = #tpu.core_type<tc>, window_params = [{transform_indices = @transform_0, window_bounds = array<i64: 8, 8, 128>}, {pipeline_mode = #tpu.pipeline_mode<synchronous>, transform_indices = @transform_1, window_bounds = array<i64: 128, 384>}, {pipeline_mode = #tpu.pipeline_mode<synchronous>, transform_indices = @transform_2, window_bounds = array<i64: 128, 384>}, {pipeline_mode = #tpu.pipeline_mode<synchronous>, transform_indices = @transform_3, window_bounds = array<i64: 1, 384>}, {pipeline_mode = #tpu.pipeline_mode<synchronous>, transform_indices = @transform_4, window_bounds = array<i64: 1, 128>}, {transform_indices = @transform_5, window_bounds = array<i64: 8, 128>}]} {
    %c0 = arith.constant 0 : index
    %c0_0 = arith.constant 0 : index
    %c0_1 = arith.constant 0 : index
    %0 = vector.load %arg1[%c0, %c0_0, %c0_1] : memref<8x8x128xf32, #tpu.memory_space<vmem>>, vector<8x8x128xf32>
    %1 = vector.shape_cast %0 : vector<8x8x128xf32> to vector<64x128xf32>
    %c0_2 = arith.constant 0 : index
    %c0_3 = arith.constant 0 : index
    %2 = vector.load %arg2[%c0_2, %c0_3] : memref<128x384xf32, #tpu.memory_space<vmem>>, vector<128x384xf32>
    %cst = arith.constant dense<0.000000e+00> : vector<64x384xf32>
    %3 = tpu.matmul %1, %2, %cst {dimension_numbers = #tpu.dot_dimension_numbers<[1], [0], [0], [1], [0, 0, 1, 1], [], []>} : vector<64x128xf32>, vector<128x384xf32>, vector<64x384xf32> -> vector<64x384xf32>
    %c0_4 = arith.constant 0 : index
    %c0_5 = arith.constant 0 : index
    %4 = vector.load %arg4[%c0_4, %c0_5] : memref<1x384xf32, #tpu.memory_space<vmem>>, vector<1x384xf32>
    %5 = vector.broadcast %4 : vector<1x384xf32> to vector<64x384xf32>
    %6 = arith.addf %3, %5 : vector<64x384xf32>
    %c0_6 = arith.constant 0 : index
    %c0_7 = arith.constant 0 : index
    %7 = vector.load %arg7[%c0_6, %c0_7] : memref<64x384xf32, #tpu.memory_space<vmem>>, vector<64x384xf32>
    tpu.vector_store %arg7[%c0_6, %c0_7], %6 {strides = array<i32>} : memref<64x384xf32, #tpu.memory_space<vmem>>, vector<64x384xf32>,
    %c0_8 = arith.constant 0 : index
    %c0_9 = arith.constant 0 : index
    %8 = vector.load %arg5[%c0_8, %c0_9] : memref<1x128xf32, #tpu.memory_space<vmem>>, vector<1x128xf32>
    %9 = vector.shape_cast %8 : vector<1x128xf32> to vector<1x128xf32>
    %10 = vector.broadcast %9 : vector<1x128xf32> to vector<8x128xf32>
    %cst_10 = arith.constant 0.000000e+00 : f32
    %11 = vector.broadcast %cst_10 : f32 to vector<8x128xf32>
    %c0_11 = arith.constant 0 : index
    %c0_12 = arith.constant 0 : index
    %12 = vector.load %arg7[%c0_11, %c0_12] : memref<64x384xf32, #tpu.memory_space<vmem>>, vector<8x384xf32>
    %c0_13 = arith.constant 0 : index
    %c0_14 = arith.constant 0 : index
    %13 = vector.load %arg3[%c0_13, %c0_14] : memref<128x384xf32, #tpu.memory_space<vmem>>, vector<128x384xf32>
    %cst_15 = arith.constant dense<0.000000e+00> : vector<8x384xf32>
    %14 = tpu.matmul %11, %13, %cst_15 {dimension_numbers = #tpu.dot_dimension_numbers<[1], [0], [0], [1], [0, 0, 1, 1], [], []>} : vector<8x128xf32>, vector<128x384xf32>, vector<8x384xf32> -> vector<8x384xf32>
    %15 = vector.extract_strided_slice %12 {offsets = [0, 0], sizes = [8, 128], strides = [1, 1]} : vector<8x384xf32> to vector<8x128xf32>
    %16 = vector.extract_strided_slice %14 {offsets = [0, 0], sizes = [8, 128], strides = [1, 1]} : vector<8x384xf32> to vector<8x128xf32>
    %17 = arith.addf %15, %16 : vector<8x128xf32>
    %18 = arith.negf %17 : vector<8x128xf32>
    %19 = math.exp %18 : vector<8x128xf32>
    %cst_16 = arith.constant 1.000000e+00 : f32
    %20 = vector.broadcast %cst_16 : f32 to vector<8x128xf32>
    %21 = arith.addf %20, %19 : vector<8x128xf32>
    %22 = arith.divf %20, %21 : vector<8x128xf32>
    %23 = vector.extract_strided_slice %12 {offsets = [0, 128], sizes = [8, 128], strides = [1, 1]} : vector<8x384xf32> to vector<8x128xf32>
    %24 = vector.extract_strided_slice %14 {offsets = [0, 128], sizes = [8, 128], strides = [1, 1]} : vector<8x384xf32> to vector<8x128xf32>
    %25 = arith.addf %23, %24 : vector<8x128xf32>
    %26 = arith.negf %25 : vector<8x128xf32>
    %27 = math.exp %26 : vector<8x128xf32>
    %cst_17 = arith.constant 1.000000e+00 : f32
    %28 = vector.broadcast %cst_17 : f32 to vector<8x128xf32>
    %29 = arith.addf %28, %27 : vector<8x128xf32>
    %30 = arith.divf %28, %29 : vector<8x128xf32>
    %31 = vector.extract_strided_slice %12 {offsets = [0, 256], sizes = [8, 128], strides = [1, 1]} : vector<8x384xf32> to vector<8x128xf32>
    %32 = vector.extract_strided_slice %14 {offsets = [0, 256], sizes = [8, 128], strides = [1, 1]} : vector<8x384xf32> to vector<8x128xf32>
    %33 = arith.addf %32, %10 : vector<8x128xf32>
    %34 = arith.mulf %22, %33 : vector<8x128xf32>
    %35 = arith.addf %31, %34 : vector<8x128xf32>
    %36 = math.tanh %35 : vector<8x128xf32>
    %37 = arith.subf %11, %36 : vector<8x128xf32>
    %38 = arith.mulf %30, %37 : vector<8x128xf32>
    %39 = arith.addf %36, %38 : vector<8x128xf32>
    %c8 = arith.constant 8 : index
    %c0_18 = arith.constant 0 : index
    %40 = vector.load %arg7[%c8, %c0_18] : memref<64x384xf32, #tpu.memory_space<vmem>>, vector<8x384xf32>
    %c0_19 = arith.constant 0 : index
    %c0_20 = arith.constant 0 : index
    %41 = vector.load %arg3[%c0_19, %c0_20] : memref<128x384xf32, #tpu.memory_space<vmem>>, vector<128x384xf32>
    %cst_21 = arith.constant dense<0.000000e+00> : vector<8x384xf32>
    %42 = tpu.matmul %39, %41, %cst_21 {dimension_numbers = #tpu.dot_dimension_numbers<[1], [0], [0], [1], [0, 0, 1, 1], [], []>} : vector<8x128xf32>, vector<128x384xf32>, vector<8x384xf32> -> vector<8x384xf32>
    %43 = vector.extract_strided_slice %40 {offsets = [0, 0], sizes = [8, 128], strides = [1, 1]} : vector<8x384xf32> to vector<8x128xf32>
    %44 = vector.extract_strided_slice %42 {offsets = [0, 0], sizes = [8, 128], strides = [1, 1]} : vector<8x384xf32> to vector<8x128xf32>
    %45 = arith.addf %43, %44 : vector<8x128xf32>
    %46 = arith.negf %45 : vector<8x128xf32>
    %47 = math.exp %46 : vector<8x128xf32>
    %cst_22 = arith.constant 1.000000e+00 : f32
    %48 = vector.broadcast %cst_22 : f32 to vector<8x128xf32>
    %49 = arith.addf %48, %47 : vector<8x128xf32>
    %50 = arith.divf %48, %49 : vector<8x128xf32>
    %51 = vector.extract_strided_slice %40 {offsets = [0, 128], sizes = [8, 128], strides = [1, 1]} : vector<8x384xf32> to vector<8x128xf32>
    %52 = vector.extract_strided_slice %42 {offsets = [0, 128], sizes = [8, 128], strides = [1, 1]} : vector<8x384xf32> to vector<8x128xf32>
    %53 = arith.addf %51, %52 : vector<8x128xf32>
    %54 = arith.negf %53 : vector<8x128xf32>
    %55 = math.exp %54 : vector<8x128xf32>
    %cst_23 = arith.constant 1.000000e+00 : f32
    %56 = vector.broadcast %cst_23 : f32 to vector<8x128xf32>
    %57 = arith.addf %56, %55 : vector<8x128xf32>
    %58 = arith.divf %56, %57 : vector<8x128xf32>
    %59 = vector.extract_strided_slice %40 {offsets = [0, 256], sizes = [8, 128], strides = [1, 1]} : vector<8x384xf32> to vector<8x128xf32>
    %60 = vector.extract_strided_slice %42 {offsets = [0, 256], sizes = [8, 128], strides = [1, 1]} : vector<8x384xf32> to vector<8x128xf32>
    %61 = arith.addf %60, %10 : vector<8x128xf32>
    %62 = arith.mulf %50, %61 : vector<8x128xf32>
    %63 = arith.addf %59, %62 : vector<8x128xf32>
    %64 = math.tanh %63 : vector<8x128xf32>
    %65 = arith.subf %39, %64 : vector<8x128xf32>
    %66 = arith.mulf %58, %65 : vector<8x128xf32>
    %67 = arith.addf %64, %66 : vector<8x128xf32>
    %c16 = arith.constant 16 : index
    %c0_24 = arith.constant 0 : index
    %68 = vector.load %arg7[%c16, %c0_24] : memref<64x384xf32, #tpu.memory_space<vmem>>, vector<8x384xf32>
    %c0_25 = arith.constant 0 : index
    %c0_26 = arith.constant 0 : index
    %69 = vector.load %arg3[%c0_25, %c0_26] : memref<128x384xf32, #tpu.memory_space<vmem>>, vector<128x384xf32>
    %cst_27 = arith.constant dense<0.000000e+00> : vector<8x384xf32>
    %70 = tpu.matmul %67, %69, %cst_27 {dimension_numbers = #tpu.dot_dimension_numbers<[1], [0], [0], [1], [0, 0, 1, 1], [], []>} : vector<8x128xf32>, vector<128x384xf32>, vector<8x384xf32> -> vector<8x384xf32>
    %71 = vector.extract_strided_slice %68 {offsets = [0, 0], sizes = [8, 128], strides = [1, 1]} : vector<8x384xf32> to vector<8x128xf32>
    %72 = vector.extract_strided_slice %70 {offsets = [0, 0], sizes = [8, 128], strides = [1, 1]} : vector<8x384xf32> to vector<8x128xf32>
    %73 = arith.addf %71, %72 : vector<8x128xf32>
    %74 = arith.negf %73 : vector<8x128xf32>
    %75 = math.exp %74 : vector<8x128xf32>
    %cst_28 = arith.constant 1.000000e+00 : f32
    %76 = vector.broadcast %cst_28 : f32 to vector<8x128xf32>
    %77 = arith.addf %76, %75 : vector<8x128xf32>
    %78 = arith.divf %76, %77 : vector<8x128xf32>
    %79 = vector.extract_strided_slice %68 {offsets = [0, 128], sizes = [8, 128], strides = [1, 1]} : vector<8x384xf32> to vector<8x128xf32>
    %80 = vector.extract_strided_slice %70 {offsets = [0, 128], sizes = [8, 128], strides = [1, 1]} : vector<8x384xf32> to vector<8x128xf32>
    %81 = arith.addf %79, %80 : vector<8x128xf32>
    %82 = arith.negf %81 : vector<8x128xf32>
    %83 = math.exp %82 : vector<8x128xf32>
    %cst_29 = arith.constant 1.000000e+00 : f32
    %84 = vector.broadcast %cst_29 : f32 to vector<8x128xf32>
    %85 = arith.addf %84, %83 : vector<8x128xf32>
    %86 = arith.divf %84, %85 : vector<8x128xf32>
    %87 = vector.extract_strided_slice %68 {offsets = [0, 256], sizes = [8, 128], strides = [1, 1]} : vector<8x384xf32> to vector<8x128xf32>
    %88 = vector.extract_strided_slice %70 {offsets = [0, 256], sizes = [8, 128], strides = [1, 1]} : vector<8x384xf32> to vector<8x128xf32>
    %89 = arith.addf %88, %10 : vector<8x128xf32>
    %90 = arith.mulf %78, %89 : vector<8x128xf32>
    %91 = arith.addf %87, %90 : vector<8x128xf32>
    %92 = math.tanh %91 : vector<8x128xf32>
    %93 = arith.subf %67, %92 : vector<8x128xf32>
    %94 = arith.mulf %86, %93 : vector<8x128xf32>
    %95 = arith.addf %92, %94 : vector<8x128xf32>
    %c24 = arith.constant 24 : index
    %c0_30 = arith.constant 0 : index
    %96 = vector.load %arg7[%c24, %c0_30] : memref<64x384xf32, #tpu.memory_space<vmem>>, vector<8x384xf32>
    %c0_31 = arith.constant 0 : index
    %c0_32 = arith.constant 0 : index
    %97 = vector.load %arg3[%c0_31, %c0_32] : memref<128x384xf32, #tpu.memory_space<vmem>>, vector<128x384xf32>
    %cst_33 = arith.constant dense<0.000000e+00> : vector<8x384xf32>
    %98 = tpu.matmul %95, %97, %cst_33 {dimension_numbers = #tpu.dot_dimension_numbers<[1], [0], [0], [1], [0, 0, 1, 1], [], []>} : vector<8x128xf32>, vector<128x384xf32>, vector<8x384xf32> -> vector<8x384xf32>
    %99 = vector.extract_strided_slice %96 {offsets = [0, 0], sizes = [8, 128], strides = [1, 1]} : vector<8x384xf32> to vector<8x128xf32>
    %100 = vector.extract_strided_slice %98 {offsets = [0, 0], sizes = [8, 128], strides = [1, 1]} : vector<8x384xf32> to vector<8x128xf32>
    %101 = arith.addf %99, %100 : vector<8x128xf32>
    %102 = arith.negf %101 : vector<8x128xf32>
    %103 = math.exp %102 : vector<8x128xf32>
    %cst_34 = arith.constant 1.000000e+00 : f32
    %104 = vector.broadcast %cst_34 : f32 to vector<8x128xf32>
    %105 = arith.addf %104, %103 : vector<8x128xf32>
    %106 = arith.divf %104, %105 : vector<8x128xf32>
    %107 = vector.extract_strided_slice %96 {offsets = [0, 128], sizes = [8, 128], strides = [1, 1]} : vector<8x384xf32> to vector<8x128xf32>
    %108 = vector.extract_strided_slice %98 {offsets = [0, 128], sizes = [8, 128], strides = [1, 1]} : vector<8x384xf32> to vector<8x128xf32>
    %109 = arith.addf %107, %108 : vector<8x128xf32>
    %110 = arith.negf %109 : vector<8x128xf32>
    %111 = math.exp %110 : vector<8x128xf32>
    %cst_35 = arith.constant 1.000000e+00 : f32
    %112 = vector.broadcast %cst_35 : f32 to vector<8x128xf32>
    %113 = arith.addf %112, %111 : vector<8x128xf32>
    %114 = arith.divf %112, %113 : vector<8x128xf32>
    %115 = vector.extract_strided_slice %96 {offsets = [0, 256], sizes = [8, 128], strides = [1, 1]} : vector<8x384xf32> to vector<8x128xf32>
    %116 = vector.extract_strided_slice %98 {offsets = [0, 256], sizes = [8, 128], strides = [1, 1]} : vector<8x384xf32> to vector<8x128xf32>
    %117 = arith.addf %116, %10 : vector<8x128xf32>
    %118 = arith.mulf %106, %117 : vector<8x128xf32>
    %119 = arith.addf %115, %118 : vector<8x128xf32>
    %120 = math.tanh %119 : vector<8x128xf32>
    %121 = arith.subf %95, %120 : vector<8x128xf32>
    %122 = arith.mulf %114, %121 : vector<8x128xf32>
    %123 = arith.addf %120, %122 : vector<8x128xf32>
    %c32 = arith.constant 32 : index
    %c0_36 = arith.constant 0 : index
    %124 = vector.load %arg7[%c32, %c0_36] : memref<64x384xf32, #tpu.memory_space<vmem>>, vector<8x384xf32>
    %c0_37 = arith.constant 0 : index
    %c0_38 = arith.constant 0 : index
    %125 = vector.load %arg3[%c0_37, %c0_38] : memref<128x384xf32, #tpu.memory_space<vmem>>, vector<128x384xf32>
    %cst_39 = arith.constant dense<0.000000e+00> : vector<8x384xf32>
    %126 = tpu.matmul %123, %125, %cst_39 {dimension_numbers = #tpu.dot_dimension_numbers<[1], [0], [0], [1], [0, 0, 1, 1], [], []>} : vector<8x128xf32>, vector<128x384xf32>, vector<8x384xf32> -> vector<8x384xf32>
    %127 = vector.extract_strided_slice %124 {offsets = [0, 0], sizes = [8, 128], strides = [1, 1]} : vector<8x384xf32> to vector<8x128xf32>
    %128 = vector.extract_strided_slice %126 {offsets = [0, 0], sizes = [8, 128], strides = [1, 1]} : vector<8x384xf32> to vector<8x128xf32>
    %129 = arith.addf %127, %128 : vector<8x128xf32>
    %130 = arith.negf %129 : vector<8x128xf32>
    %131 = math.exp %130 : vector<8x128xf32>
    %cst_40 = arith.constant 1.000000e+00 : f32
    %132 = vector.broadcast %cst_40 : f32 to vector<8x128xf32>
    %133 = arith.addf %132, %131 : vector<8x128xf32>
    %134 = arith.divf %132, %133 : vector<8x128xf32>
    %135 = vector.extract_strided_slice %124 {offsets = [0, 128], sizes = [8, 128], strides = [1, 1]} : vector<8x384xf32> to vector<8x128xf32>
    %136 = vector.extract_strided_slice %126 {offsets = [0, 128], sizes = [8, 128], strides = [1, 1]} : vector<8x384xf32> to vector<8x128xf32>
    %137 = arith.addf %135, %136 : vector<8x128xf32>
    %138 = arith.negf %137 : vector<8x128xf32>
    %139 = math.exp %138 : vector<8x128xf32>
    %cst_41 = arith.constant 1.000000e+00 : f32
    %140 = vector.broadcast %cst_41 : f32 to vector<8x128xf32>
    %141 = arith.addf %140, %139 : vector<8x128xf32>
    %142 = arith.divf %140, %141 : vector<8x128xf32>
    %143 = vector.extract_strided_slice %124 {offsets = [0, 256], sizes = [8, 128], strides = [1, 1]} : vector<8x384xf32> to vector<8x128xf32>
    %144 = vector.extract_strided_slice %126 {offsets = [0, 256], sizes = [8, 128], strides = [1, 1]} : vector<8x384xf32> to vector<8x128xf32>
    %145 = arith.addf %144, %10 : vector<8x128xf32>
    %146 = arith.mulf %134, %145 : vector<8x128xf32>
    %147 = arith.addf %143, %146 : vector<8x128xf32>
    %148 = math.tanh %147 : vector<8x128xf32>
    %149 = arith.subf %123, %148 : vector<8x128xf32>
    %150 = arith.mulf %142, %149 : vector<8x128xf32>
    %151 = arith.addf %148, %150 : vector<8x128xf32>
    %c40 = arith.constant 40 : index
    %c0_42 = arith.constant 0 : index
    %152 = vector.load %arg7[%c40, %c0_42] : memref<64x384xf32, #tpu.memory_space<vmem>>, vector<8x384xf32>
    %c0_43 = arith.constant 0 : index
    %c0_44 = arith.constant 0 : index
    %153 = vector.load %arg3[%c0_43, %c0_44] : memref<128x384xf32, #tpu.memory_space<vmem>>, vector<128x384xf32>
    %cst_45 = arith.constant dense<0.000000e+00> : vector<8x384xf32>
    %154 = tpu.matmul %151, %153, %cst_45 {dimension_numbers = #tpu.dot_dimension_numbers<[1], [0], [0], [1], [0, 0, 1, 1], [], []>} : vector<8x128xf32>, vector<128x384xf32>, vector<8x384xf32> -> vector<8x384xf32>
    %155 = vector.extract_strided_slice %152 {offsets = [0, 0], sizes = [8, 128], strides = [1, 1]} : vector<8x384xf32> to vector<8x128xf32>
    %156 = vector.extract_strided_slice %154 {offsets = [0, 0], sizes = [8, 128], strides = [1, 1]} : vector<8x384xf32> to vector<8x128xf32>
    %157 = arith.addf %155, %156 : vector<8x128xf32>
    %158 = arith.negf %157 : vector<8x128xf32>
    %159 = math.exp %158 : vector<8x128xf32>
    %cst_46 = arith.constant 1.000000e+00 : f32
    %160 = vector.broadcast %cst_46 : f32 to vector<8x128xf32>
    %161 = arith.addf %160, %159 : vector<8x128xf32>
    %162 = arith.divf %160, %161 : vector<8x128xf32>
    %163 = vector.extract_strided_slice %152 {offsets = [0, 128], sizes = [8, 128], strides = [1, 1]} : vector<8x384xf32> to vector<8x128xf32>
    %164 = vector.extract_strided_slice %154 {offsets = [0, 128], sizes = [8, 128], strides = [1, 1]} : vector<8x384xf32> to vector<8x128xf32>
    %165 = arith.addf %163, %164 : vector<8x128xf32>
    %166 = arith.negf %165 : vector<8x128xf32>
    %167 = math.exp %166 : vector<8x128xf32>
    %cst_47 = arith.constant 1.000000e+00 : f32
    %168 = vector.broadcast %cst_47 : f32 to vector<8x128xf32>
    %169 = arith.addf %168, %167 : vector<8x128xf32>
    %170 = arith.divf %168, %169 : vector<8x128xf32>
    %171 = vector.extract_strided_slice %152 {offsets = [0, 256], sizes = [8, 128], strides = [1, 1]} : vector<8x384xf32> to vector<8x128xf32>
    %172 = vector.extract_strided_slice %154 {offsets = [0, 256], sizes = [8, 128], strides = [1, 1]} : vector<8x384xf32> to vector<8x128xf32>
    %173 = arith.addf %172, %10 : vector<8x128xf32>
    %174 = arith.mulf %162, %173 : vector<8x128xf32>
    %175 = arith.addf %171, %174 : vector<8x128xf32>
    %176 = math.tanh %175 : vector<8x128xf32>
    %177 = arith.subf %151, %176 : vector<8x128xf32>
    %178 = arith.mulf %170, %177 : vector<8x128xf32>
    %179 = arith.addf %176, %178 : vector<8x128xf32>
    %c48 = arith.constant 48 : index
    %c0_48 = arith.constant 0 : index
    %180 = vector.load %arg7[%c48, %c0_48] : memref<64x384xf32, #tpu.memory_space<vmem>>, vector<8x384xf32>
    %c0_49 = arith.constant 0 : index
    %c0_50 = arith.constant 0 : index
    %181 = vector.load %arg3[%c0_49, %c0_50] : memref<128x384xf32, #tpu.memory_space<vmem>>, vector<128x384xf32>
    %cst_51 = arith.constant dense<0.000000e+00> : vector<8x384xf32>
    %182 = tpu.matmul %179, %181, %cst_51 {dimension_numbers = #tpu.dot_dimension_numbers<[1], [0], [0], [1], [0, 0, 1, 1], [], []>} : vector<8x128xf32>, vector<128x384xf32>, vector<8x384xf32> -> vector<8x384xf32>
    %183 = vector.extract_strided_slice %180 {offsets = [0, 0], sizes = [8, 128], strides = [1, 1]} : vector<8x384xf32> to vector<8x128xf32>
    %184 = vector.extract_strided_slice %182 {offsets = [0, 0], sizes = [8, 128], strides = [1, 1]} : vector<8x384xf32> to vector<8x128xf32>
    %185 = arith.addf %183, %184 : vector<8x128xf32>
    %186 = arith.negf %185 : vector<8x128xf32>
    %187 = math.exp %186 : vector<8x128xf32>
    %cst_52 = arith.constant 1.000000e+00 : f32
    %188 = vector.broadcast %cst_52 : f32 to vector<8x128xf32>
    %189 = arith.addf %188, %187 : vector<8x128xf32>
    %190 = arith.divf %188, %189 : vector<8x128xf32>
    %191 = vector.extract_strided_slice %180 {offsets = [0, 128], sizes = [8, 128], strides = [1, 1]} : vector<8x384xf32> to vector<8x128xf32>
    %192 = vector.extract_strided_slice %182 {offsets = [0, 128], sizes = [8, 128], strides = [1, 1]} : vector<8x384xf32> to vector<8x128xf32>
    %193 = arith.addf %191, %192 : vector<8x128xf32>
    %194 = arith.negf %193 : vector<8x128xf32>
    %195 = math.exp %194 : vector<8x128xf32>
    %cst_53 = arith.constant 1.000000e+00 : f32
    %196 = vector.broadcast %cst_53 : f32 to vector<8x128xf32>
    %197 = arith.addf %196, %195 : vector<8x128xf32>
    %198 = arith.divf %196, %197 : vector<8x128xf32>
    %199 = vector.extract_strided_slice %180 {offsets = [0, 256], sizes = [8, 128], strides = [1, 1]} : vector<8x384xf32> to vector<8x128xf32>
    %200 = vector.extract_strided_slice %182 {offsets = [0, 256], sizes = [8, 128], strides = [1, 1]} : vector<8x384xf32> to vector<8x128xf32>
    %201 = arith.addf %200, %10 : vector<8x128xf32>
    %202 = arith.mulf %190, %201 : vector<8x128xf32>
    %203 = arith.addf %199, %202 : vector<8x128xf32>
    %204 = math.tanh %203 : vector<8x128xf32>
    %205 = arith.subf %179, %204 : vector<8x128xf32>
    %206 = arith.mulf %198, %205 : vector<8x128xf32>
    %207 = arith.addf %204, %206 : vector<8x128xf32>
    %c56 = arith.constant 56 : index
    %c0_54 = arith.constant 0 : index
    %208 = vector.load %arg7[%c56, %c0_54] : memref<64x384xf32, #tpu.memory_space<vmem>>, vector<8x384xf32>
    %c0_55 = arith.constant 0 : index
    %c0_56 = arith.constant 0 : index
    %209 = vector.load %arg3[%c0_55, %c0_56] : memref<128x384xf32, #tpu.memory_space<vmem>>, vector<128x384xf32>
    %cst_57 = arith.constant dense<0.000000e+00> : vector<8x384xf32>
    %210 = tpu.matmul %207, %209, %cst_57 {dimension_numbers = #tpu.dot_dimension_numbers<[1], [0], [0], [1], [0, 0, 1, 1], [], []>} : vector<8x128xf32>, vector<128x384xf32>, vector<8x384xf32> -> vector<8x384xf32>
    %211 = vector.extract_strided_slice %208 {offsets = [0, 0], sizes = [8, 128], strides = [1, 1]} : vector<8x384xf32> to vector<8x128xf32>
    %212 = vector.extract_strided_slice %210 {offsets = [0, 0], sizes = [8, 128], strides = [1, 1]} : vector<8x384xf32> to vector<8x128xf32>
    %213 = arith.addf %211, %212 : vector<8x128xf32>
    %214 = arith.negf %213 : vector<8x128xf32>
    %215 = math.exp %214 : vector<8x128xf32>
    %cst_58 = arith.constant 1.000000e+00 : f32
    %216 = vector.broadcast %cst_58 : f32 to vector<8x128xf32>
    %217 = arith.addf %216, %215 : vector<8x128xf32>
    %218 = arith.divf %216, %217 : vector<8x128xf32>
    %219 = vector.extract_strided_slice %208 {offsets = [0, 128], sizes = [8, 128], strides = [1, 1]} : vector<8x384xf32> to vector<8x128xf32>
    %220 = vector.extract_strided_slice %210 {offsets = [0, 128], sizes = [8, 128], strides = [1, 1]} : vector<8x384xf32> to vector<8x128xf32>
    %221 = arith.addf %219, %220 : vector<8x128xf32>
    %222 = arith.negf %221 : vector<8x128xf32>
    %223 = math.exp %222 : vector<8x128xf32>
    %cst_59 = arith.constant 1.000000e+00 : f32
    %224 = vector.broadcast %cst_59 : f32 to vector<8x128xf32>
    %225 = arith.addf %224, %223 : vector<8x128xf32>
    %226 = arith.divf %224, %225 : vector<8x128xf32>
    %227 = vector.extract_strided_slice %208 {offsets = [0, 256], sizes = [8, 128], strides = [1, 1]} : vector<8x384xf32> to vector<8x128xf32>
    %228 = vector.extract_strided_slice %210 {offsets = [0, 256], sizes = [8, 128], strides = [1, 1]} : vector<8x384xf32> to vector<8x128xf32>
    %229 = arith.addf %228, %10 : vector<8x128xf32>
    %230 = arith.mulf %218, %229 : vector<8x128xf32>
    %231 = arith.addf %227, %230 : vector<8x128xf32>
    %232 = math.tanh %231 : vector<8x128xf32>
    %233 = arith.subf %207, %232 : vector<8x128xf32>
    %234 = arith.mulf %226, %233 : vector<8x128xf32>
    %235 = arith.addf %232, %234 : vector<8x128xf32>
    %c0_60 = arith.constant 0 : index
    %c0_61 = arith.constant 0 : index
    %236 = vector.load %arg6[%c0_60, %c0_61] : memref<8x128xf32, #tpu.memory_space<vmem>>, vector<8x128xf32>
    tpu.vector_store %arg6[%c0_60, %c0_61], %235 {strides = array<i32>} : memref<8x128xf32, #tpu.memory_space<vmem>>, vector<8x128xf32>,
    return
  }
  func.func @transform_0(%arg0: i32) -> (i32, i32, i32) {
    %c0_i32 = arith.constant 0 : i32
    %c0_i32_0 = arith.constant 0 : i32
    %c0_i32_1 = arith.constant 0 : i32
    return %c0_i32, %arg0, %c0_i32_0 : i32, i32, i32
  }
  func.func @transform_1(%arg0: i32) -> (i32, i32) {
    %c0_i32 = arith.constant 0 : i32
    %c0_i32_0 = arith.constant 0 : i32
    %c0_i32_1 = arith.constant 0 : i32
    return %c0_i32, %c0_i32_0 : i32, i32
  }
  func.func @transform_2(%arg0: i32) -> (i32, i32) {
    %c0_i32 = arith.constant 0 : i32
    %c0_i32_0 = arith.constant 0 : i32
    %c0_i32_1 = arith.constant 0 : i32
    return %c0_i32, %c0_i32_0 : i32, i32
  }
  func.func @transform_3(%arg0: i32) -> (i32, i32) {
    %c0_i32 = arith.constant 0 : i32
    %c0_i32_0 = arith.constant 0 : i32
    %c0_i32_1 = arith.constant 0 : i32
    return %c0_i32, %c0_i32_0 : i32, i32
  }
  func.func @transform_4(%arg0: i32) -> (i32, i32) {
    %c0_i32 = arith.constant 0 : i32
    %c0_i32_0 = arith.constant 0 : i32
    %c0_i32_1 = arith.constant 0 : i32
    return %c0_i32, %c0_i32_0 : i32, i32
  }
  func.func @transform_5(%arg0: i32) -> (i32, i32) {
    %c0_i32 = arith.constant 0 : i32
    %c0_i32_0 = arith.constant 0 : i32
    return %arg0, %c0_i32 : i32, i32
  }
}

</mosaic_0001>

<bundles_post_ra>
// kernel: tpu_custom_call.1
= control target key start
LH: loop header
LB: loop body
LE: loop exit
PB: predicated region body
PF: predicated region fallthrough
CT: control target
= control target key end

     0   :  { %10 = vsyncpa [#allocation4], 0  ;;  %s3493_s0 = inlined_call_operand.hbm [shape: f32[8,8,128], index: 0, kind: input, shape index: {}]   ;;  %s3494_s1 = inlined_call_operand.hbm [shape: f32[128,384], index: 1, kind: input, shape index: {}]   ;;  %s3495_s2 = inlined_call_operand.hbm [shape: f32[128,384], index: 2, kind: input, shape index: {}]   ;;  %s3496_s3 = inlined_call_operand.vmem [shape: f32[1,384], index: 3, kind: input, shape index: {}]   ;;  %s3497_s4 = inlined_call_operand.vmem [shape: f32[1,128], index: 4, kind: input, shape index: {}]   ;;  %s3498_s5 = inlined_call_operand.hbm [shape: f32[8,128], index: 5, kind: output, shape index: {}]  }
   0x1   :  { %11 = vsyncpa [#allocation7], 0 }
   0x2   :  { %12 = vsyncpa [#allocation5], 0  ;;  %s2999_s18 = smov [#allocation6]   ;;  %s2905_s22 = scalar_lea.hbm %s3494_s1, 6144 }
   0x3   :  { %s30_s19 = sshll.u32 %s2999_s18, 4  ;;  %p2906_p0 = scmp.ne.s32.totalorder %s3494_s1, %s2905_s22  ;;  %s31_s19 = int_to_ptr.vmem [resolvable:$true] %s30_s19 }
   0x4   :  { %p2909_p1 = scmp.lt.u32.totalorder %s2905_s22, %s3494_s1 }
   0x6   :  { %p2911_p2 = pnand %p2909_p1, %p2906_p0 }
   0x8   :  { %2914 = shalt.err (!%p2911_p2)
}
   0x9   :  { %s2915_s27 = scalar_lea.vmem %s31_s19, 6144  ;;  %p2920_p4 = scmp.lt.s32.totalorder %s31_s19, %s31_s19 }
   0xa   :  { %p2916_p3 = scmp.ne.s32.totalorder %s31_s19, %s2915_s27  ;;  %p2921_p5 = scmp.lt.s32.totalorder %s2915_s27, %s2915_s27 }
   0xc   :  { %p2922_p6 = por %p2921_p5, %p2920_p4 }
   0xe   :  { %p2923_p7 = pnand %p2922_p6, %p2916_p3 }
  0x10   :  { %2926 = shalt.err (!%p2923_p7)
}
  0x11   :  { %s3000_s28 = smov 384   ;;  %s3001_s29 = smov 24  }
  0x12   :  { %36 = dma.hbm_to_vmem [thread:$0]  %s3494_s1, 6144, %s31_s19, [#allocation7], %s3000_s28, %s3000_s28, %s3001_s29  }
  0x13   :  { %s3002_s7 = smov [#allocation3]   ;;  %s2927_s11 = scalar_lea.hbm %s3493_s0, 1024 }
  0x14   :  { %s18_s8 = sshll.u32 %s3002_s7, 4  ;;  %p2928_p8 = scmp.ne.s32.totalorder %s3493_s0, %s2927_s11  ;;  %s19_s8 = int_to_ptr.vmem [resolvable:$true] %s18_s8 }
  0x15   :  { %p2931_p9 = scmp.lt.u32.totalorder %s2927_s11, %s3493_s0 }
  0x17   :  { %p2933_p10 = pnand %p2931_p9, %p2928_p8 }
  0x19   :  { %2936 = shalt.err (!%p2933_p10)
}
  0x1a   :  { %s2937_s16 = scalar_lea.vmem %s19_s8, 1024  ;;  %p2942_p12 = scmp.lt.s32.totalorder %s19_s8, %s19_s8 }
  0x1b   :  { %p2938_p11 = scmp.ne.s32.totalorder %s19_s8, %s2937_s16  ;;  %p2943_p13 = scmp.lt.s32.totalorder %s2937_s16, %s2937_s16 }
  0x1d   :  { %p2944_p0 = por %p2943_p13, %p2942_p12 }
  0x1f   :  { %p2945_p1 = pnand %p2944_p0, %p2938_p11 }
  0x21   :  { %2948 = shalt.err (!%p2945_p1)
}
  0x22   :  { %s3003_s1 = smov 128   ;;  %s3004_s17 = smov 8  }
  0x23   :  { %24 = dma.hbm_to_vmem [thread:$0]  %s3493_s0, 1024, %s19_s8, [#allocation4], %s3003_s1, %s3003_s1, %s3004_s17  }
  0x24   :  { %s3005_s20 = smov [#allocation8]   ;;  %s2949_s24 = scalar_lea.hbm %s3495_s2, 6144 }
  0x25   :  { %s42_s21 = sshll.u32 %s3005_s20, 4  ;;  %p2950_p2 = scmp.ne.s32.totalorder %s3495_s2, %s2949_s24  ;;  %s43_s21 = int_to_ptr.vmem [resolvable:$true] %s42_s21 }
  0x26   :  { %p2953_p3 = scmp.lt.u32.totalorder %s2949_s24, %s3495_s2 }
  0x28   :  { %p2955_p4 = pnand %p2953_p3, %p2950_p2 }
  0x2a   :  { %2958 = shalt.err (!%p2955_p4)
}
  0x2b   :  { %s2959_s6 = scalar_lea.vmem %s43_s21, 6144  ;;  %p2964_p6 = scmp.lt.s32.totalorder %s43_s21, %s43_s21 }
  0x2c   :  { %p2960_p5 = scmp.ne.s32.totalorder %s43_s21, %s2959_s6  ;;  %p2965_p7 = scmp.lt.s32.totalorder %s2959_s6, %s2959_s6 }
  0x2e   :  { %p2966_p8 = por %p2965_p7, %p2964_p6 }
  0x30   :  { %p2967_p9 = pnand %p2966_p8, %p2960_p5 }
  0x32   :  { %2970 = shalt.err (!%p2967_p9)
}
  0x33   :  { %48 = dma.hbm_to_vmem [thread:$0]  %s3495_s2, 6144, %s43_s21, [#allocation7], %s3000_s28, %s3000_s28, %s3001_s29  }
  0x34   :  { %2993 = dma.done.wait [#allocation4], 1024  }
  0x35   :  { %2994 = vsyncadd [#allocation4], 4294966272 }
  0x36   :  { %2995 = dma.done.wait [#allocation7], 12288  }
  0x37   :  { %2996 = vsyncadd [#allocation7], 4294955008  ;;  %v3006_v0 = vmov 0.0   ;;  %v71_v1 = vld [vmem:[#allocation6 + $0x8] sm:$0xff]  ;;  %v74_v2 = vld [vmem:[#allocation6 + $0x20] sm:$0xff]  ;;  %vm3008_vm0 = vmmov 0  }
  0x38   :  { %199 = vmatprep.mubr.f32.mxu0 %v3006_v0  ;;  %v70_v3 = vld [vmem:[#allocation6] sm:$0xff]  ;;  %v2270_v4 = vpack.c.bf16 %v74_v2, %v71_v1  ;;  %v73_v5 = vld [vmem:[#allocation6 + $0x18] sm:$0xff]  ;;  %v80_v7 = vld [vmem:[#allocation6 + $0x50] sm:$0xff] }
  0x39   :  { %v77_v6 = vld [vmem:[#allocation6 + $0x38] sm:$0xff]  ;;  %v2272_v8 = vpack.c.bf16 %v73_v5, %v70_v3  ;;  %v76_v10 = vld [vmem:[#allocation6 + $0x30] sm:$0xff]  ;;  %v79_v11 = vld [vmem:[#allocation6 + $0x48] sm:$0xff] }
  0x3a   :  { %v2274_v9 = vpack.c.bf16 %v80_v7, %v77_v6  ;;  %v83_v12 = vld [vmem:[#allocation6 + $0x68] sm:$0xff]  ;;  %2271 = vmatprep.subr.bf16.mxu0 %v2270_v4  ;;  %v86_v13 = vld [vmem:[#allocation6 + $0x80] sm:$0xff]  ;;  %v2276_v14 = vpack.c.bf16 %v79_v11, %v76_v10  ;;  %v85_v17 = vld [vmem:[#allocation6 + $0x78] sm:$0xff] }
  0x3b   :  { %2273 = vmatpush1.bf16.msra.mxu0 %v2272_v8  ;;  %v2278_v15 = vpack.c.bf16 %v86_v13, %v83_v12  ;;  %v82_v16 = vld [vmem:[#allocation6 + $0x60] sm:$0xff]  ;;  %v89_v18 = vld [vmem:[#allocation6 + $0x98] sm:$0xff]  ;;  %v92_v19 = vld [vmem:[#allocation6 + $0xb0] sm:$0xff] }
  0x3c   :  { %2275 = vmatprep.subr.bf16.mxu0 %v2274_v9  ;;  %v2280_v20 = vpack.c.bf16 %v85_v17, %v82_v16  ;;  %v88_v21 = vld [vmem:[#allocation6 + $0x90] sm:$0xff]  ;;  %v2282_v22 = vpack.c.bf16 %v92_v19, %v89_v18  ;;  %v91_v23 = vld [vmem:[#allocation6 + $0xa8] sm:$0xff]  ;;  %v98_v27 = vld [vmem:[#allocation6 + $0xe0] sm:$0xff] }
  0x3d   :  { %v72_v24 = vld [vmem:[#allocation6 + $0x10] sm:$0xff]  ;;  %v75_v25 = vld [vmem:[#allocation6 + $0x28] sm:$0xff]  ;;  %v78_v29 = vld [vmem:[#allocation6 + $0x40] sm:$0xff]  ;;  %v2284_v31 = vpack.c.bf16 %v91_v23, %v88_v21 }
  0x3e   :  { %v95_v26 = vld [vmem:[#allocation6 + $0xc8] sm:$0xff]  ;;  %v2302_v28 = vpack.c.bf16 %v75_v25, %v72_v24  ;;  %v81_v30 = vld [vmem:[#allocation6 + $0x58] sm:$0xff]  ;;  %v94_v32 = vld [vmem:[#allocation6 + $0xc0] sm:$0xff] }
  0x3f   :  { %2277 = vmatpush1.bf16.msra.mxu0 %v2276_v14  ;;  %v2306_v33 = vpack.c.bf16 %v81_v30, %v78_v29  ;;  %v2286_v34 = vpack.c.bf16 %v98_v27, %v95_v26  ;;  %v97_v35 = vld [vmem:[#allocation6 + $0xd8] sm:$0xff]  ;;  %v3083_v36 = vld [vmem:[#allocation3] sm:$0xff]  ;;  %v84_v37 = vld [vmem:[#allocation6 + $0x70] sm:$0xff] }
  0x40   :  { %2279 = vmatprep.subr.bf16.mxu0 %v2278_v15  ;;  %2303 = vmatprep.subr.bf16.mxu1 %v2302_v28  ;;  %v101_v38 = vld [vmem:[#allocation6 + $0xf8] sm:$0xff]  ;;  %v104_v39 = vld [vmem:[#allocation6 + $0x110] sm:$0xff]  ;;  %v87_v40 = vld [vmem:[#allocation6 + $0x88] sm:$0xff]  ;;  %v2288_v42 = vpack.c.bf16 %v97_v35, %v94_v32 }
  0x41   :  { %2305 = vmatpush3.bf16.msra.mxu1 %v2302_v28  ;;  %1978 = vmatprep.mubr.f32.mxu1 %v3083_v36  ;;  %v2310_v41 = vpack.c.bf16 %v87_v40, %v84_v37  ;;  %v90_v43 = vld [vmem:[#allocation6 + $0xa0] sm:$0xff]  ;;  %v93_v44 = vld [vmem:[#allocation6 + $0xb8] sm:$0xff]  ;;  %v2290_v45 = vpack.c.bf16 %v104_v39, %v101_v38  ;;  %v100_v46 = vld [vmem:[#allocation6 + $0xf0] sm:$0xff]  ;;  %v3007_v40 = vmov 0.0|0.0  }
  0x42   :  { %2307 = vmatprep.subr.bf16.mxu1 %v2306_v33  ;;  %v103_v47 = vld [vmem:[#allocation6 + $0x108] sm:$0xff]  ;;  %v110_v49 = vld [vmem:[#allocation6 + $0x140] sm:$0xff]  ;;  %v2314_v50 = vpack.c.bf16 %v93_v44, %v90_v43  ;;  %v96_v51 = vld [vmem:[#allocation6 + $0xd0] sm:$0xff] }
  0x43   :  { %2281 = vmatpush1.bf16.msra.mxu0 %v2280_v20  ;;  %v107_v48 = vld [vmem:[#allocation6 + $0x128] sm:$0xff]  ;;  %v2292_v53 = vpack.c.bf16 %v103_v47, %v100_v46  ;;  %v106_v55 = vld [vmem:[#allocation6 + $0x120] sm:$0xff]  ;;  %v109_v56 = vld [vmem:[#allocation6 + $0x138] sm:$0xff] }
  0x44   :  { %2283 = vmatprep.subr.bf16.mxu0 %v2282_v22  ;;  %v99_v52 = vld [vmem:[#allocation6 + $0xe8] sm:$0xff]  ;;  %v2294_v54 = vpack.c.bf16 %v110_v49, %v107_v48  ;;  %v113_v57 = vld [vmem:[#allocation6 + $0x158] sm:$0xff]  ;;  %v116_v58 = vld [vmem:[#allocation6 + $0x170] sm:$0xff]  ;;  %v2296_v62 = vpack.c.bf16 %v109_v56, %v106_v55 }
  0x45   :  { %2309 = vmatpush3.bf16.msra.mxu1 %v2306_v33  ;;  %v2318_v59 = vpack.c.bf16 %v99_v52, %v96_v51  ;;  %v102_v60 = vld [vmem:[#allocation6 + $0x100] sm:$0xff]  ;;  %v105_v61 = vld [vmem:[#allocation6 + $0x118] sm:$0xff]  ;;  %v2298_v63 = vpack.c.bf16 %v116_v58, %v113_v57  ;;  %v112_v1 = vld [vmem:[#allocation6 + $0x150] sm:$0xff] }
  0x46   :  { %2311 = vmatprep.subr.bf16.mxu1 %v2310_v41  ;;  %v115_v2 = vld [vmem:[#allocation6 + $0x168] sm:$0xff]  ;;  %v391_v4 = vld [vmem:[#allocation8 + $0x20] sm:$0xff]  ;;  %v2322_v5 = vpack.c.bf16 %v105_v61, %v102_v60  ;;  %v108_v6 = vld [vmem:[#allocation6 + $0x130] sm:$0xff] }
  0x47   :  { %2285 = vmatpush1.bf16.msra.mxu0 %v2284_v31  ;;  %v388_v3 = vld [vmem:[#allocation8 + $0x8] sm:$0xff]  ;;  %v2300_v8 = vpack.c.bf16 %v115_v2, %v112_v1  ;;  %v387_v10 = vld [vmem:[#allocation8] sm:$0xff]  ;;  %v390_v11 = vld [vmem:[#allocation8 + $0x18] sm:$0xff] }
  0x48   :  { %2287 = vmatprep.subr.bf16.mxu0 %v2286_v34  ;;  %v111_v7 = vld [vmem:[#allocation6 + $0x148] sm:$0xff]  ;;  %v3086_v9 = vpack.c.bf16 %v391_v4, %v388_v3  ;;  %v394_v12 = vld [vmem:[#allocation8 + $0x38] sm:$0xff]  ;;  %v397_v13 = vld [vmem:[#allocation8 + $0x50] sm:$0xff]  ;;  %v3088_v17 = vpack.c.bf16 %v390_v11, %v387_v10 }
  0x49   :  { %2313 = vmatpush3.bf16.msra.mxu1 %v2310_v41  ;;  %v2326_v14 = vpack.c.bf16 %v111_v7, %v108_v6  ;;  %v114_v15 = vld [vmem:[#allocation6 + $0x160] sm:$0xff]  ;;  %v117_v16 = vld [vmem:[#allocation6 + $0x178] sm:$0xff]  ;;  %v3091_v18 = vpack.c.bf16 %v397_v13, %v394_v12  ;;  %v393_v19 = vld [vmem:[#allocation8 + $0x30] sm:$0xff] }
  0x4a   :  { %2315 = vmatprep.subr.bf16.mxu1 %v2314_v50  ;;  %v396_v20 = vld [vmem:[#allocation8 + $0x48] sm:$0xff]  ;;  %v403_v22 = vld [vmem:[#allocation8 + $0x80] sm:$0xff]  ;;  %v2330_v23 = vpack.c.bf16 %v117_v16, %v114_v15  ;;  %v402_v28 = vld [vmem:[#allocation8 + $0x78] sm:$0xff] }
  0x4b   :  { %2289 = vmatpush1.bf16.msra.mxu0 %v2288_v42  ;;  %v400_v21 = vld [vmem:[#allocation8 + $0x68] sm:$0xff]  ;;  %v3096_v25 = vpack.c.bf16 %v396_v20, %v393_v19  ;;  %v399_v27 = vld [vmem:[#allocation8 + $0x60] sm:$0xff]  ;;  %v406_v29 = vld [vmem:[#allocation8 + $0x98] sm:$0xff] }
  0x4c   :  { %2291 = vmatprep.subr.bf16.mxu0 %v2290_v45  ;;  %v63_v24 = vld [vmem:[#allocation3 + $0x8] sm:$0xff]  ;;  %v3099_v26 = vpack.c.bf16 %v403_v22, %v400_v21  ;;  %v409_v30 = vld [vmem:[#allocation8 + $0xb0] sm:$0xff]  ;;  %v3103_v34 = vpack.c.bf16 %v402_v28, %v399_v27  ;;  %v415_v39 = vld [vmem:[#allocation8 + $0xe0] sm:$0xff] }
  0x4d   :  { %2317 = vmatpush3.bf16.msra.mxu1 %v2314_v50  ;;  %v389_v31 = vld [vmem:[#allocation8 + $0x10] sm:$0xff]  ;;  %v392_v32 = vld [vmem:[#allocation8 + $0x28] sm:$0xff]  ;;  %v3106_v35 = vpack.c.bf16 %v409_v30, %v406_v29  ;;  %v395_v42 = vld [vmem:[#allocation8 + $0x40] sm:$0xff] }
  0x4e   :  { %2319 = vmatprep.subr.bf16.mxu1 %v2318_v59  ;;  %v64_v33 = vld [vmem:[#allocation3 + $0x10] sm:$0xff]  ;;  %v408_v37 = vld [vmem:[#allocation8 + $0xa8] sm:$0xff]  ;;  %v3109_v41 = vpack.c.bf16 %v392_v32, %v389_v31  ;;  %v398_v43 = vld [vmem:[#allocation8 + $0x58] sm:$0xff] }
  0x4f   :  { %2293 = vmatpush1.bf16.msra.mxu0 %v2292_v53  ;;  %v412_v38 = vld [vmem:[#allocation8 + $0xc8] sm:$0xff]  ;;  %v65_v44 = vld [vmem:[#allocation3 + $0x18] sm:$0xff]  ;;  %v411_v47 = vld [vmem:[#allocation8 + $0xc0] sm:$0xff]  ;;  %v3119_v51 = vpack.c.bf16 %v398_v43, %v395_v42 }
  0x50   :  { %2295 = vmatprep.subr.bf16.mxu0 %v2294_v54  ;;  %v3116_v46 = vpack.c.bf16 %v415_v39, %v412_v38  ;;  %v414_v48 = vld [vmem:[#allocation8 + $0xd8] sm:$0xff]  ;;  %v421_v50 = vld [vmem:[#allocation8 + $0x110] sm:$0xff]  ;;  %v404_v53 = vld [vmem:[#allocation8 + $0x88] sm:$0xff] }
  0x51   :  { %2321 = vmatpush3.bf16.msra.mxu1 %v2318_v59  ;;  %v418_v49 = vld [vmem:[#allocation8 + $0xf8] sm:$0xff]  ;;  %v401_v52 = vld [vmem:[#allocation8 + $0x70] sm:$0xff]  ;;  %v66_v54 = vld [vmem:[#allocation3 + $0x20] sm:$0xff]  ;;  %v3124_v55 = vpack.c.bf16 %v414_v48, %v411_v47 }
  0x52   :  { %2323 = vmatprep.subr.bf16.mxu1 %v2322_v5  ;;  %v3127_v56 = vpack.c.bf16 %v421_v50, %v418_v49  ;;  %v417_v57 = vld [vmem:[#allocation8 + $0xf0] sm:$0xff]  ;;  %v420_v58 = vld [vmem:[#allocation8 + $0x108] sm:$0xff]  ;;  %v427_v60 = vld [vmem:[#allocation8 + $0x140] sm:$0xff]  ;;  %v3130_v61 = vpack.c.bf16 %v404_v53, %v401_v52 }
  0x53   :  { %2297 = vmatpush1.bf16.msra.mxu0 %v2296_v62  ;;  %v424_v59 = vld [vmem:[#allocation8 + $0x128] sm:$0xff]  ;;  %v407_v62 = vld [vmem:[#allocation8 + $0xa0] sm:$0xff]  ;;  %v3135_v2 = vpack.c.bf16 %v420_v58, %v417_v57  ;;  %v68_v3 = vld [vmem:[#allocation3 + $0x30] sm:$0xff] }
  0x54   :  { %2299 = vmatprep.subr.bf16.mxu0 %v2298_v63  ;;  %v410_v63 = vld [vmem:[#allocation8 + $0xb8] sm:$0xff]  ;;  %v67_v1 = vld [vmem:[#allocation3 + $0x28] sm:$0xff]  ;;  %v3138_v4 = vpack.c.bf16 %v427_v60, %v424_v59  ;;  %v413_v11 = vld [vmem:[#allocation8 + $0xd0] sm:$0xff] }
  0x55   :  { %2325 = vmatpush3.bf16.msra.mxu1 %v2322_v5  ;;  %v423_v5 = vld [vmem:[#allocation8 + $0x120] sm:$0xff]  ;;  %v426_v6 = vld [vmem:[#allocation8 + $0x138] sm:$0xff]  ;;  %v3141_v10 = vpack.c.bf16 %v410_v63, %v407_v62  ;;  %v416_v12 = vld [vmem:[#allocation8 + $0xe8] sm:$0xff] }
  0x56   :  { %2327 = vmatprep.subr.bf16.mxu1 %v2326_v14  ;;  %v430_v7 = vld [vmem:[#allocation8 + $0x158] sm:$0xff]  ;;  %v3146_v13 = vpack.c.bf16 %v426_v6, %v423_v5  ;;  %v429_v16 = vld [vmem:[#allocation8 + $0x150] sm:$0xff]  ;;  %v432_v19 = vld [vmem:[#allocation8 + $0x168] sm:$0xff]  ;;  %v3152_v20 = vpack.c.bf16 %v416_v12, %v413_v11 }
  0x57   :  { %2301 = vmatpush1.bf16.msra.mxu0 %v2300_v8  ;;  %v433_v8 = vld [vmem:[#allocation8 + $0x170] sm:$0xff]  ;;  %v419_v21 = vld [vmem:[#allocation8 + $0x100] sm:$0xff]  ;;  %v422_v22 = vld [vmem:[#allocation8 + $0x118] sm:$0xff] }
  0x58   :  { %2335 = vmatprep.subr.bf16.mxu0 %v3086_v9  ;;  %v3149_v15 = vpack.c.bf16 %v433_v8, %v430_v7  ;;  %v425_v27 = vld [vmem:[#allocation8 + $0x130] sm:$0xff]  ;;  %v428_v28 = vld [vmem:[#allocation8 + $0x148] sm:$0xff]  ;;  %v431_v30 = vld [vmem:[#allocation8 + $0x160] sm:$0xff] }
  0x59   :  { %2329 = vmatpush3.bf16.msra.mxu1 %v2326_v14  ;;  %v69_v14 = vld [vmem:[#allocation3 + $0x38] sm:$0xff]  ;;  %v3170_v29 = vpack.c.bf16 %v428_v28, %v425_v27  ;;  %v118_v38 = vld [vmem:[%s3496_s3] sm:$0x7] }
  0x5a   :  { %200 = vmatmul.mubr.f32.vlgmr.msra.gmra.mrb[0].mxu0 %v3083_v36  ;;  %2331 = vmatprep.subr.bf16.mxu1 %v2330_v23  ;;  %v405_v36 = vld [vmem:[#allocation8 + $0x90] sm:$0xff]  ;;  %v434_v31 = vld [vmem:[#allocation8 + $0x178] sm:$0xff]  ;;  %v3242_v27 = vld [vmem:[%s3497_s4] ss:$0 sm:$0xff]  ;;  %s3009_s4 = smov [#allocation9]  }
  0x5b   :  { %2337 = vmatpush1.bf16.msra.mxu0 %v3088_v17  ;;  %205 = vmatprep.mubr.f32.mxu0 %v3006_v0  ;;  %v3113_v45 = vpack.c.bf16 %v408_v37, %v405_v36  ;;  %v3178_v32 = vpack.c.bf16 %v434_v31, %v431_v30  ;;  %s1759_s8 = sshll.u32 %s3009_s4, 4  ;;  %s1760_s8 = int_to_ptr.vmem [resolvable:$true] %s1759_s8 }
  0x5c   :  { %2339 = vmatprep.subr.bf16.mxu0 %v3091_v18  ;;  %s2971_s9 = scalar_lea.vmem %s1760_s8, 128  ;;  %p2976_p11 = scmp.lt.s32.totalorder %s1760_s8, %s1760_s8 }
  0x5d   :  { %2333 = vmatpush3.bf16.msra.mxu1 %v2330_v23  ;;  %v3159_v23 = vpack.c.bf16 %v432_v19, %v429_v16  ;;  %p2972_p10 = scmp.ne.s32.totalorder %s1760_s8, %s2971_s9  ;;  %p2977_p12 = scmp.lt.s32.totalorder %s2971_s9, %s2971_s9 }
  0x5e   :  { %206 = vmatmul.mubr.f32.gmra.mrb[2].mxu0 %v63_v24  ;;  %2366 = vmatprep.subr.bf16.mxu1 %v3007_v40 }
  0x5f   :  { %2341 = vmatpush1.bf16.msra.mxu0 %v3096_v25  ;;  %211 = vmatprep.mubr.f32.mxu0 %v3006_v0  ;;  %p2978_p13 = por %p2977_p12, %p2976_p11 }
  0x60   :  { %2343 = vmatprep.subr.bf16.mxu0 %v3099_v26  ;;  %1979 = vmatmul.mubr.f32.vlgmr.msra.gmra.mrb[0].mxu1 %v63_v24  ;;  %v3163_v24 = vpack.c.bf16 %v422_v22, %v419_v21 }
  0x61   :  { %2368 = vmatpush3.bf16.msra.mxu1 %v3109_v41  ;;  %1981 = vmatprep.mubr.f32.mxu1 %v64_v33  ;;  %p2979_p0 = pnand %p2978_p13, %p2972_p10 }
  0x62   :  { %212 = vmatmul.mubr.f32.gmra.mrb[4].mxu0 %v64_v33  ;;  %2369 = vmatprep.subr.bf16.mxu1 %v3007_v40  ;;  %v120_v33 = vlaneseq }
  0x63   :  { %2345 = vmatpush1.bf16.msra.mxu0 %v3103_v34  ;;  %217 = vmatprep.mubr.f32.mxu0 %v3006_v0 }
  0x64   :  { %2347 = vmatprep.subr.bf16.mxu0 %v3106_v35  ;;  %1982 = vmatmul.mubr.f32.gmra.mrb[2].mxu1 %v65_v44  ;;  %v121_v36 = vshrl.u32 %v120_v33, 7 }
  0x65   :  { %2371 = vmatpush3.bf16.msra.mxu1 %v3119_v51  ;;  %1984 = vmatprep.mubr.f32.mxu1 %v66_v54 }
  0x66   :  { %218 = vmatmul.mubr.f32.gmra.mrb[6].mxu0 %v65_v44  ;;  %2372 = vmatprep.subr.bf16.mxu1 %v3007_v40  ;;  %v130_v37 = vsub.s32 2, %v121_v36  ;;  %v122_v63 = vsub.s32 0, %v121_v36  ;;  %v126_v6 = vsub.s32 1, %v121_v36 }
  0x67   :  { %2349 = vmatpush1.bf16.msra.mxu0 %v3113_v45  ;;  %223 = vmatprep.mubr.f32.mxu0 %v3006_v0 }
  0x68   :  { %2351 = vmatprep.subr.bf16.mxu0 %v3116_v46  ;;  %1985 = vmatmul.mubr.f32.gmra.mrb[4].mxu1 %v67_v1  ;;  %v131_v39 = vrot.slane %v118_v38, %v130_v37  ;;  %v3236_v11 = vrot.slane %v118_v38, %v126_v6 }
  0x69   :  { %2374 = vmatpush3.bf16.msra.mxu1 %v3130_v61  ;;  %1987 = vmatprep.mubr.f32.mxu1 %v68_v3 }
  0x6a   :  { %224 = vmatmul.mubr.f32.gmra.mrb[8].mxu0 %v66_v54  ;;  %2375 = vmatprep.subr.bf16.mxu1 %v3007_v40 }
  0x6b   :  { %2353 = vmatpush1.bf16.msra.mxu0 %v3124_v55  ;;  %229 = vmatprep.mubr.f32.mxu0 %v3006_v0 }
  0x6c   :  { %2355 = vmatprep.subr.bf16.mxu0 %v3127_v56  ;;  %1988 = vmatmul.mubr.f32.gmra.mrb[6].mxu1 %v69_v14 }
  0x6d   :  { %2377 = vmatpush3.bf16.msra.mxu1 %v3141_v10  ;;  %2022 = vmatprep.mubr.msk.f32.mxu1 %vm3008_vm0, %v3006_v0 }
  0x6e   :  { %230 = vmatmul.mubr.f32.gmra.mrb[10].mxu0 %v67_v1  ;;  %2378 = vmatprep.subr.bf16.mxu1 %v3007_v40  ;;  %v3233_v1 = vrot.slane %v118_v38, %v122_v63 }
  0x6f   :  { %2357 = vmatpush1.bf16.msra.mxu0 %v3135_v2  ;;  %235 = vmatprep.mubr.f32.mxu0 %v3006_v0 }
  0x70   :  { %2359 = vmatprep.subr.bf16.mxu0 %v3138_v4 }
  0x71   :  { %2380 = vmatpush3.bf16.msra.mxu1 %v3152_v20 }
  0x72   :  { %236 = vmatmul.mubr.f32.gmra.mrb[12].mxu0 %v68_v3  ;;  %2381 = vmatprep.subr.bf16.mxu1 %v3007_v40 }
  0x73   :  { %2361 = vmatpush1.bf16.msra.mxu0 %v3146_v13  ;;  %241 = vmatprep.mubr.f32.mxu0 %v3006_v0 }
  0x74   :  { %2363 = vmatprep.subr.bf16.mxu0 %v3149_v15 }
  0x75   :  { %2383 = vmatpush3.bf16.msra.mxu1 %v3163_v24 }
  0x76   :  { %242 = vmatmul.mubr.f32.gmra.mrb[14].mxu0 %v69_v14  ;;  %2384 = vmatprep.subr.bf16.mxu1 %v3007_v40 }
  0x77   :  { %2365 = vmatpush1.bf16.msra.mxu0 %v3159_v23  ;;  %499 = vmatprep.mubr.f32.mxu0 %v3006_v0 }
  0x78   :  { %2391 = vmatprep.subr.bf16.mxu0 %v3086_v9 }
  0x79   :  { %2386 = vmatpush3.bf16.msra.mxu1 %v3170_v29 }
  0x7a   :  { %500 = vmatmul.mubr.f32.vlgmr.msra.gmra.mrb[0].mxu0 %v3006_v0  ;;  %2387 = vmatprep.subr.bf16.mxu1 %v3007_v40 }
  0x7b   :  { %2393 = vmatpush1.bf16.msra.mxu0 %v3088_v17  ;;  %664 = vmatprep.mubr.f32.mxu0 %v3006_v0 }
  0x7c   :  { %2395 = vmatprep.subr.bf16.mxu0 %v3091_v18 }
  0x7d   :  { %2389 = vmatpush3.bf16.msra.mxu1 %v3178_v32 }
  0x7e   :  { %2422 = vmatprep.subr.bf16.mxu1 %v3007_v40 }
  0x7f   :  { %2397 = vmatpush1.bf16.msra.mxu0 %v3096_v25 }
  0x80   :  { %2399 = vmatprep.subr.bf16.mxu0 %v3099_v26  ;;  %2023 = vmatmul.mubr.f32.vlgmr.msra.gmra.mrb[8].mxu1 %v3006_v0 }
  0x81   :  { %2424 = vmatpush3.bf16.msra.mxu1 %v3109_v41  ;;  %2057 = vmatprep.mubr.msk.f32.mxu1 %vm3008_vm0, %v3006_v0 }
  0x82   :  { %2425 = vmatprep.subr.bf16.mxu1 %v3007_v40 }
  0x83   :  { %2401 = vmatpush1.bf16.msra.mxu0 %v3103_v34 }
  0x84   :  { %2403 = vmatprep.subr.bf16.mxu0 %v3106_v35 }
  0x85   :  { %2427 = vmatpush3.bf16.msra.mxu1 %v3119_v51 }
  0x86   :  { %2428 = vmatprep.subr.bf16.mxu1 %v3007_v40 }
  0x87   :  { %2405 = vmatpush1.bf16.msra.mxu0 %v3113_v45 }
  0x88   :  { %2407 = vmatprep.subr.bf16.mxu0 %v3116_v46 }
  0x89   :  { %2430 = vmatpush3.bf16.msra.mxu1 %v3130_v61 }
  0x8a   :  { %2431 = vmatprep.subr.bf16.mxu1 %v3007_v40 }
  0x8b   :  { %2409 = vmatpush1.bf16.msra.mxu0 %v3124_v55 }
  0x8c   :  { %2411 = vmatprep.subr.bf16.mxu0 %v3127_v56 }
  0x8d   :  { %2433 = vmatpush3.bf16.msra.mxu1 %v3141_v10 }
  0x8e   :  { %2434 = vmatprep.subr.bf16.mxu1 %v3007_v40 }
  0x8f   :  { %2413 = vmatpush1.bf16.msra.mxu0 %v3135_v2 }
  0x90   :  { %2415 = vmatprep.subr.bf16.mxu0 %v3138_v4 }
  0x91   :  { %2436 = vmatpush3.bf16.msra.mxu1 %v3152_v20 }
  0x92   :  { %2437 = vmatprep.subr.bf16.mxu1 %v3007_v40 }
  0x93   :  { %2417 = vmatpush1.bf16.msra.mxu0 %v3146_v13 }
  0x94   :  { %2419 = vmatprep.subr.bf16.mxu0 %v3149_v15 }
  0x95   :  { %2439 = vmatpush3.bf16.msra.mxu1 %v3163_v24 }
  0x96   :  { %2440 = vmatprep.subr.bf16.mxu1 %v3007_v40 }
  0x97   :  { %2421 = vmatpush1.bf16.msra.mxu0 %v3159_v23 }
  0x98   :  { %2447 = vmatprep.subr.bf16.mxu0 %v3086_v9 }
  0x99   :  { %2442 = vmatpush3.bf16.msra.mxu1 %v3170_v29 }
  0x9a   :  { %2443 = vmatprep.subr.bf16.mxu1 %v3007_v40 }
  0x9d   :  { %2445 = vmatpush3.bf16.msra.mxu1 %v3178_v32 }
  0x9e   :  { %2478 = vmatprep.subr.bf16.mxu1 %v3007_v40 }
 0x133   :  { %v1980_v42 = vpop.f32.mrb[0].mxu1 }
 0x134   :  { %v3219_v43 = vadd.f32 %v1980_v42, %v131_v39  ;;  %v314_v44 = vpop.f32.mrb[1].mxu1 }
 0x135   :  { %v315_v33 = vadd.f32 %v314_v44, %v131_v39 }
 0x137   :  { %v1983_v47 = vpop.f32.mrb[2].mxu1 }
 0x138   :  { %v3221_v48 = vadd.f32 %v1983_v47, %v131_v39  ;;  %v324_v49 = vpop.f32.mrb[3].mxu1 }
 0x139   :  { %v3223_v50 = vadd.f32 %v324_v49, %v131_v39 }
 0x13b   :  { %v1986_v52 = vpop.f32.mrb[4].mxu1 }
 0x13c   :  { %v3225_v53 = vadd.f32 %v1986_v52, %v131_v39  ;;  %v334_v54 = vpop.f32.mrb[5].mxu1 }
 0x13d   :  { %v3227_v57 = vadd.f32 %v334_v54, %v131_v39 }
 0x13f   :  { %v1989_v58 = vpop.f32.mrb[6].mxu1 }
 0x140   :  { %v3229_v59 = vadd.f32 %v1989_v58, %v131_v39  ;;  %v344_v60 = vpop.f32.mrb[7].mxu1 }
 0x141   :  { %v3231_v62 = vadd.f32 %v344_v60, %v131_v39 }
 0x14d   :  { %v501_v3 = vpop.f32.mrb[0].mxu0 }
 0x14e   :  { %v2782_v5 = vadd.f32 %v501_v3, %v3233_v1  ;;  %v503_v7 = vpop.f32.mrb[1].mxu0 }
 0x14f   :  { %v2783_v12 = vadd.f32 %v503_v7, %v3236_v11 }
 0x150   :  { %v1770_v8 = vmul.f32 -1.442695, %v2782_v5 }
 0x151   :  { %v1771_v19 = vmul.f32 -1.442695, %v2783_v12 }
 0x152   :  { %2825 = vpow2.f32 %v1770_v8 }
 0x153   :  { %v572_v14 = vpop.f32.mrb[8].mxu1  ;;  %2827 = vpow2.f32 %v1771_v19 }
 0x154   :  { %v2024_v16 = vpop.f32.mrb[9].mxu1  ;;  %v590_v28 = vadd.f32 %v3242_v27, %v572_v14 }
 0x15c   :  { %v2826_v21 = vpop.eup %2825 }
 0x15d   :  { %v580_v22 = vadd.f32 1.0, %v2826_v21  ;;  %v2828_v30 = vpop.eup %2827 }
 0x15e   :  { %v587_v37 = vadd.f32 1.0, %v2828_v30 }
 0x15f   :  { %2829 = vrcp.f32 %v580_v22 }
 0x169   :  { %v2830_v31 = vpop.eup %2829 }
 0x16a   :  { %v591_v36 = vmul.f32 %v2830_v31, %v590_v28 }
 0x16c   :  { %v592_v38 = vadd.f32 %v591_v36, %v315_v33 }
 0x16e   :  { %2831 = vtanh.f32 %v592_v38 }
 0x16f   :  { %2833 = vrcp.f32 %v587_v37 }
 0x178   :  { %v2832_v42 = vpop.eup %2831 }
 0x179   :  { %v594_v47 = vsub.f32 0.0, %v2832_v42  ;;  %v2834_v49 = vpop.eup %2833 }
 0x17b   :  { %v595_v52 = vmul.f32 %v2834_v49, %v594_v47 }
 0x17d   :  { %v596_v54 = vadd.f32 %v2832_v42, %v595_v52 }
 0x17f   :  { %665 = vmatmul.mubr.f32.vlgmr.msra.gmra.mrb[2].mxu0 %v596_v54  ;;  %2058 = vmatmul.mubr.f32.vlgmr.msra.gmra.mrb[10].mxu1 %v596_v54 }
 0x180   :  { %2449 = vmatpush1.bf16.msra.mxu0 %v3088_v17  ;;  %2480 = vmatpush3.bf16.msra.mxu1 %v3109_v41 }
 0x181   :  { %2451 = vmatprep.subr.bf16.mxu0 %v3091_v18  ;;  %2481 = vmatprep.subr.bf16.mxu1 %v3007_v40 }
 0x182   :  { %829 = vmatprep.mubr.f32.mxu0 %v3006_v0  ;;  %2092 = vmatprep.mubr.msk.f32.mxu1 %vm3008_vm0, %v3006_v0 }
 0x184   :  { %2453 = vmatpush1.bf16.msra.mxu0 %v3096_v25  ;;  %2483 = vmatpush3.bf16.msra.mxu1 %v3119_v51 }
 0x185   :  { %2455 = vmatprep.subr.bf16.mxu0 %v3099_v26  ;;  %2484 = vmatprep.subr.bf16.mxu1 %v3007_v40 }
 0x188   :  { %2457 = vmatpush1.bf16.msra.mxu0 %v3103_v34  ;;  %2486 = vmatpush3.bf16.msra.mxu1 %v3130_v61 }
 0x189   :  { %2459 = vmatprep.subr.bf16.mxu0 %v3106_v35  ;;  %2487 = vmatprep.subr.bf16.mxu1 %v3007_v40 }
 0x18c   :  { %2461 = vmatpush1.bf16.msra.mxu0 %v3113_v45  ;;  %2489 = vmatpush3.bf16.msra.mxu1 %v3141_v10 }
 0x18d   :  { %2463 = vmatprep.subr.bf16.mxu0 %v3116_v46  ;;  %2490 = vmatprep.subr.bf16.mxu1 %v3007_v40 }
 0x190   :  { %2465 = vmatpush1.bf16.msra.mxu0 %v3124_v55  ;;  %2492 = vmatpush3.bf16.msra.mxu1 %v3152_v20 }
 0x191   :  { %2467 = vmatprep.subr.bf16.mxu0 %v3127_v56  ;;  %2493 = vmatprep.subr.bf16.mxu1 %v3007_v40 }
 0x194   :  { %2469 = vmatpush1.bf16.msra.mxu0 %v3135_v2  ;;  %2495 = vmatpush3.bf16.msra.mxu1 %v3163_v24 }
 0x195   :  { %2471 = vmatprep.subr.bf16.mxu0 %v3138_v4  ;;  %2496 = vmatprep.subr.bf16.mxu1 %v3007_v40 }
 0x198   :  { %2473 = vmatpush1.bf16.msra.mxu0 %v3146_v13  ;;  %2498 = vmatpush3.bf16.msra.mxu1 %v3170_v29 }
 0x199   :  { %2475 = vmatprep.subr.bf16.mxu0 %v3149_v15  ;;  %2499 = vmatprep.subr.bf16.mxu1 %v3007_v40 }
 0x19c   :  { %2477 = vmatpush1.bf16.msra.mxu0 %v3159_v23  ;;  %2501 = vmatpush3.bf16.msra.mxu1 %v3178_v32 }
 0x19d   :  { %2503 = vmatprep.subr.bf16.mxu0 %v3086_v9  ;;  %2534 = vmatprep.subr.bf16.mxu1 %v3007_v40 }
 0x252   :  { %v666_v39 = vpop.f32.mrb[2].mxu0  ;;  %v737_v44 = vpop.f32.mrb[10].mxu1 }
 0x253   :  { %v2784_v58 = vadd.f32 %v666_v39, %v3233_v1  ;;  %v668_v60 = vpop.f32.mrb[3].mxu0  ;;  %v2059_v63 = vpop.f32.mrb[11].mxu1  ;;  %v755_v14 = vadd.f32 %v3242_v27, %v737_v44 }
 0x254   :  { %v2785_v5 = vadd.f32 %v668_v60, %v3236_v11 }
 0x255   :  { %v1772_v3 = vmul.f32 -1.442695, %v2784_v58 }
 0x256   :  { %v1773_v6 = vmul.f32 -1.442695, %v2785_v5 }
 0x257   :  { %2835 = vpow2.f32 %v1772_v3 }
 0x258   :  { %2837 = vpow2.f32 %v1773_v6 }
 0x261   :  { %v2836_v7 = vpop.eup %2835 }
 0x262   :  { %v745_v8 = vadd.f32 1.0, %v2836_v7  ;;  %v2838_v12 = vpop.eup %2837 }
 0x263   :  { %v752_v22 = vadd.f32 1.0, %v2838_v12 }
 0x264   :  { %2839 = vrcp.f32 %v745_v8 }
 0x26e   :  { %v2840_v16 = vpop.eup %2839 }
 0x26f   :  { %v756_v19 = vmul.f32 %v2840_v16, %v755_v14 }
 0x271   :  { %v757_v21 = vadd.f32 %v756_v19, %v3219_v43 }
 0x273   :  { %2841 = vtanh.f32 %v757_v21 }
 0x274   :  { %2843 = vrcp.f32 %v752_v22 }
 0x27d   :  { %v2842_v28 = vpop.eup %2841 }
 0x27e   :  { %v759_v30 = vsub.f32 %v596_v54, %v2842_v28  ;;  %v2844_v31 = vpop.eup %2843 }
 0x280   :  { %v760_v33 = vmul.f32 %v2844_v31, %v759_v30 }
 0x282   :  { %v761_v36 = vadd.f32 %v2842_v28, %v760_v33 }
 0x284   :  { %830 = vmatmul.mubr.f32.vlgmr.msra.gmra.mrb[4].mxu0 %v761_v36  ;;  %2093 = vmatmul.mubr.f32.vlgmr.msra.gmra.mrb[12].mxu1 %v761_v36 }
 0x285   :  { %2505 = vmatpush1.bf16.msra.mxu0 %v3088_v17  ;;  %2536 = vmatpush3.bf16.msra.mxu1 %v3109_v41 }
 0x286   :  { %2507 = vmatprep.subr.bf16.mxu0 %v3091_v18  ;;  %2537 = vmatprep.subr.bf16.mxu1 %v3007_v40 }
 0x287   :  { %994 = vmatprep.mubr.f32.mxu0 %v3006_v0  ;;  %2127 = vmatprep.mubr.msk.f32.mxu1 %vm3008_vm0, %v3006_v0 }
 0x289   :  { %2509 = vmatpush1.bf16.msra.mxu0 %v3096_v25  ;;  %2539 = vmatpush3.bf16.msra.mxu1 %v3119_v51 }
 0x28a   :  { %2511 = vmatprep.subr.bf16.mxu0 %v3099_v26  ;;  %2540 = vmatprep.subr.bf16.mxu1 %v3007_v40 }
 0x28d   :  { %2513 = vmatpush1.bf16.msra.mxu0 %v3103_v34  ;;  %2542 = vmatpush3.bf16.msra.mxu1 %v3130_v61 }
 0x28e   :  { %2515 = vmatprep.subr.bf16.mxu0 %v3106_v35  ;;  %2543 = vmatprep.subr.bf16.mxu1 %v3007_v40 }
 0x291   :  { %2517 = vmatpush1.bf16.msra.mxu0 %v3113_v45  ;;  %2545 = vmatpush3.bf16.msra.mxu1 %v3141_v10 }
 0x292   :  { %2519 = vmatprep.subr.bf16.mxu0 %v3116_v46  ;;  %2546 = vmatprep.subr.bf16.mxu1 %v3007_v40 }
 0x295   :  { %2521 = vmatpush1.bf16.msra.mxu0 %v3124_v55  ;;  %2548 = vmatpush3.bf16.msra.mxu1 %v3152_v20 }
 0x296   :  { %2523 = vmatprep.subr.bf16.mxu0 %v3127_v56  ;;  %2549 = vmatprep.subr.bf16.mxu1 %v3007_v40 }
 0x299   :  { %2525 = vmatpush1.bf16.msra.mxu0 %v3135_v2  ;;  %2551 = vmatpush3.bf16.msra.mxu1 %v3163_v24 }
 0x29a   :  { %2527 = vmatprep.subr.bf16.mxu0 %v3138_v4  ;;  %2552 = vmatprep.subr.bf16.mxu1 %v3007_v40 }
 0x29d   :  { %2529 = vmatpush1.bf16.msra.mxu0 %v3146_v13  ;;  %2554 = vmatpush3.bf16.msra.mxu1 %v3170_v29 }
 0x29e   :  { %2531 = vmatprep.subr.bf16.mxu0 %v3149_v15  ;;  %2555 = vmatprep.subr.bf16.mxu1 %v3007_v40 }
 0x2a1   :  { %2533 = vmatpush1.bf16.msra.mxu0 %v3159_v23  ;;  %2557 = vmatpush3.bf16.msra.mxu1 %v3178_v32 }
 0x2a2   :  { %2559 = vmatprep.subr.bf16.mxu0 %v3086_v9  ;;  %2590 = vmatprep.subr.bf16.mxu1 %v3007_v40 }
 0x357   :  { %v831_v43 = vpop.f32.mrb[4].mxu0  ;;  %v902_v37 = vpop.f32.mrb[12].mxu1 }
 0x358   :  { %v2786_v38 = vadd.f32 %v831_v43, %v3233_v1  ;;  %v833_v42 = vpop.f32.mrb[5].mxu0  ;;  %v2094_v47 = vpop.f32.mrb[13].mxu1  ;;  %v920_v60 = vadd.f32 %v3242_v27, %v902_v37 }
 0x359   :  { %v2787_v52 = vadd.f32 %v833_v42, %v3236_v11 }
 0x35a   :  { %v1774_v49 = vmul.f32 -1.442695, %v2786_v38 }
 0x35b   :  { %v1775_v54 = vmul.f32 -1.442695, %v2787_v52 }
 0x35c   :  { %2845 = vpow2.f32 %v1774_v49 }
 0x35d   :  { %2847 = vpow2.f32 %v1775_v54 }
 0x366   :  { %v2846_v39 = vpop.eup %2845 }
 0x367   :  { %v910_v44 = vadd.f32 1.0, %v2846_v39  ;;  %v2848_v58 = vpop.eup %2847 }
 0x368   :  { %v917_v6 = vadd.f32 1.0, %v2848_v58 }
 0x369   :  { %2849 = vrcp.f32 %v910_v44 }
 0x373   :  { %v2850_v63 = vpop.eup %2849 }
 0x374   :  { %v921_v3 = vmul.f32 %v2850_v63, %v920_v60 }
 0x376   :  { %v922_v5 = vadd.f32 %v921_v3, %v3223_v50 }
 0x378   :  { %2851 = vtanh.f32 %v922_v5 }
 0x379   :  { %2853 = vrcp.f32 %v917_v6 }
 0x382   :  { %v2852_v7 = vpop.eup %2851 }
 0x383   :  { %v924_v8 = vsub.f32 %v761_v36, %v2852_v7  ;;  %v2854_v12 = vpop.eup %2853 }
 0x385   :  { %v925_v14 = vmul.f32 %v2854_v12, %v924_v8 }
 0x387   :  { %v926_v16 = vadd.f32 %v2852_v7, %v925_v14 }
 0x389   :  { %995 = vmatmul.mubr.f32.vlgmr.msra.gmra.mrb[6].mxu0 %v926_v16  ;;  %2128 = vmatmul.mubr.f32.vlgmr.msra.gmra.mrb[14].mxu1 %v926_v16 }
 0x38a   :  { %2561 = vmatpush1.bf16.msra.mxu0 %v3088_v17  ;;  %2592 = vmatpush3.bf16.msra.mxu1 %v3109_v41 }
 0x38b   :  { %2563 = vmatprep.subr.bf16.mxu0 %v3091_v18  ;;  %2593 = vmatprep.subr.bf16.mxu1 %v3007_v40 }
 0x38c   :  { %1159 = vmatprep.mubr.f32.mxu0 %v3006_v0  ;;  %2162 = vmatprep.mubr.msk.f32.mxu1 %vm3008_vm0, %v3006_v0 }
 0x38e   :  { %2565 = vmatpush1.bf16.msra.mxu0 %v3096_v25  ;;  %2595 = vmatpush3.bf16.msra.mxu1 %v3119_v51 }
 0x38f   :  { %2567 = vmatprep.subr.bf16.mxu0 %v3099_v26  ;;  %2596 = vmatprep.subr.bf16.mxu1 %v3007_v40 }
 0x392   :  { %2569 = vmatpush1.bf16.msra.mxu0 %v3103_v34  ;;  %2598 = vmatpush3.bf16.msra.mxu1 %v3130_v61 }
 0x393   :  { %2571 = vmatprep.subr.bf16.mxu0 %v3106_v35  ;;  %2599 = vmatprep.subr.bf16.mxu1 %v3007_v40 }
 0x396   :  { %2573 = vmatpush1.bf16.msra.mxu0 %v3113_v45  ;;  %2601 = vmatpush3.bf16.msra.mxu1 %v3141_v10 }
 0x397   :  { %2575 = vmatprep.subr.bf16.mxu0 %v3116_v46  ;;  %2602 = vmatprep.subr.bf16.mxu1 %v3007_v40 }
 0x39a   :  { %2577 = vmatpush1.bf16.msra.mxu0 %v3124_v55  ;;  %2604 = vmatpush3.bf16.msra.mxu1 %v3152_v20 }
 0x39b   :  { %2579 = vmatprep.subr.bf16.mxu0 %v3127_v56  ;;  %2605 = vmatprep.subr.bf16.mxu1 %v3007_v40 }
 0x39e   :  { %2581 = vmatpush1.bf16.msra.mxu0 %v3135_v2  ;;  %2607 = vmatpush3.bf16.msra.mxu1 %v3163_v24 }
 0x39f   :  { %2583 = vmatprep.subr.bf16.mxu0 %v3138_v4  ;;  %2608 = vmatprep.subr.bf16.mxu1 %v3007_v40 }
 0x3a2   :  { %2585 = vmatpush1.bf16.msra.mxu0 %v3146_v13  ;;  %2610 = vmatpush3.bf16.msra.mxu1 %v3170_v29 }
 0x3a3   :  { %2587 = vmatprep.subr.bf16.mxu0 %v3149_v15  ;;  %2611 = vmatprep.subr.bf16.mxu1 %v3007_v40 }
 0x3a6   :  { %2589 = vmatpush1.bf16.msra.mxu0 %v3159_v23  ;;  %2613 = vmatpush3.bf16.msra.mxu1 %v3178_v32 }
 0x3a7   :  { %2615 = vmatprep.subr.bf16.mxu0 %v3086_v9  ;;  %2646 = vmatprep.subr.bf16.mxu1 %v3007_v40 }
 0x45c   :  { %v996_v50 = vpop.f32.mrb[6].mxu0  ;;  %v1067_v19 = vpop.f32.mrb[14].mxu1 }
 0x45d   :  { %v2788_v21 = vadd.f32 %v996_v50, %v3233_v1  ;;  %v998_v22 = vpop.f32.mrb[7].mxu0  ;;  %v2129_v28 = vpop.f32.mrb[15].mxu1  ;;  %v1085_v38 = vadd.f32 %v3242_v27, %v1067_v19 }
 0x45e   :  { %v2789_v31 = vadd.f32 %v998_v22, %v3236_v11 }
 0x45f   :  { %v1776_v30 = vmul.f32 -1.442695, %v2788_v21 }
 0x460   :  { %v1777_v33 = vmul.f32 -1.442695, %v2789_v31 }
 0x461   :  { %2855 = vpow2.f32 %v1776_v30 }
 0x462   :  { %2857 = vpow2.f32 %v1777_v33 }
 0x46b   :  { %v2856_v36 = vpop.eup %2855 }
 0x46c   :  { %v1075_v43 = vadd.f32 1.0, %v2856_v36  ;;  %v2858_v37 = vpop.eup %2857 }
 0x46d   :  { %v1082_v52 = vadd.f32 1.0, %v2858_v37 }
 0x46e   :  { %2859 = vrcp.f32 %v1075_v43 }
 0x478   :  { %v2860_v42 = vpop.eup %2859 }
 0x479   :  { %v1086_v47 = vmul.f32 %v2860_v42, %v1085_v38 }
 0x47b   :  { %v1087_v49 = vadd.f32 %v1086_v47, %v3221_v48 }
 0x47d   :  { %2861 = vtanh.f32 %v1087_v49 }
 0x47e   :  { %2863 = vrcp.f32 %v1082_v52 }
 0x487   :  { %v2862_v54 = vpop.eup %2861 }
 0x488   :  { %v1089_v39 = vsub.f32 %v926_v16, %v2862_v54  ;;  %v2864_v44 = vpop.eup %2863 }
 0x48a   :  { %v1090_v58 = vmul.f32 %v2864_v44, %v1089_v39 }
 0x48c   :  { %v1091_v60 = vadd.f32 %v2862_v54, %v1090_v58 }
 0x48e   :  { %1160 = vmatmul.mubr.f32.vlgmr.msra.gmra.mrb[8].mxu0 %v1091_v60  ;;  %2163 = vmatmul.mubr.f32.vlgmr.msra.gmra.mrb[16].mxu1 %v1091_v60 }
 0x48f   :  { %2617 = vmatpush1.bf16.msra.mxu0 %v3088_v17  ;;  %2648 = vmatpush3.bf16.msra.mxu1 %v3109_v41 }
 0x490   :  { %2619 = vmatprep.subr.bf16.mxu0 %v3091_v18  ;;  %2649 = vmatprep.subr.bf16.mxu1 %v3007_v40 }
 0x491   :  { %1324 = vmatprep.mubr.f32.mxu0 %v3006_v0  ;;  %2197 = vmatprep.mubr.msk.f32.mxu1 %vm3008_vm0, %v3006_v0 }
 0x493   :  { %2621 = vmatpush1.bf16.msra.mxu0 %v3096_v25  ;;  %2651 = vmatpush3.bf16.msra.mxu1 %v3119_v51 }
 0x494   :  { %2623 = vmatprep.subr.bf16.mxu0 %v3099_v26  ;;  %2652 = vmatprep.subr.bf16.mxu1 %v3007_v40 }
 0x497   :  { %2625 = vmatpush1.bf16.msra.mxu0 %v3103_v34  ;;  %2654 = vmatpush3.bf16.msra.mxu1 %v3130_v61 }
 0x498   :  { %2627 = vmatprep.subr.bf16.mxu0 %v3106_v35  ;;  %2655 = vmatprep.subr.bf16.mxu1 %v3007_v40 }
 0x49b   :  { %2629 = vmatpush1.bf16.msra.mxu0 %v3113_v45  ;;  %2657 = vmatpush3.bf16.msra.mxu1 %v3141_v10 }
 0x49c   :  { %2631 = vmatprep.subr.bf16.mxu0 %v3116_v46  ;;  %2658 = vmatprep.subr.bf16.mxu1 %v3007_v40 }
 0x49f   :  { %2633 = vmatpush1.bf16.msra.mxu0 %v3124_v55  ;;  %2660 = vmatpush3.bf16.msra.mxu1 %v3152_v20 }
 0x4a0   :  { %2635 = vmatprep.subr.bf16.mxu0 %v3127_v56  ;;  %2661 = vmatprep.subr.bf16.mxu1 %v3007_v40 }
 0x4a3   :  { %2637 = vmatpush1.bf16.msra.mxu0 %v3135_v2  ;;  %2663 = vmatpush3.bf16.msra.mxu1 %v3163_v24 }
 0x4a4   :  { %2639 = vmatprep.subr.bf16.mxu0 %v3138_v4  ;;  %2664 = vmatprep.subr.bf16.mxu1 %v3007_v40 }
 0x4a7   :  { %2641 = vmatpush1.bf16.msra.mxu0 %v3146_v13  ;;  %2666 = vmatpush3.bf16.msra.mxu1 %v3170_v29 }
 0x4a8   :  { %2643 = vmatprep.subr.bf16.mxu0 %v3149_v15  ;;  %2667 = vmatprep.subr.bf16.mxu1 %v3007_v40 }
 0x4ab   :  { %2645 = vmatpush1.bf16.msra.mxu0 %v3159_v23  ;;  %2669 = vmatpush3.bf16.msra.mxu1 %v3178_v32 }
 0x4ac   :  { %2671 = vmatprep.subr.bf16.mxu0 %v3086_v9  ;;  %2702 = vmatprep.subr.bf16.mxu1 %v3007_v40 }
 0x561   :  { %v1161_v48 = vpop.f32.mrb[8].mxu0  ;;  %v1232_v63 = vpop.f32.mrb[16].mxu1 }
 0x562   :  { %v2790_v3 = vadd.f32 %v1161_v48, %v3233_v1  ;;  %v1163_v5 = vpop.f32.mrb[9].mxu0  ;;  %v2164_v6 = vpop.f32.mrb[17].mxu1  ;;  %v1250_v19 = vadd.f32 %v3242_v27, %v1232_v63 }
 0x563   :  { %v2791_v8 = vadd.f32 %v1163_v5, %v3236_v11 }
 0x564   :  { %v1778_v7 = vmul.f32 -1.442695, %v2790_v3 }
 0x565   :  { %v1779_v12 = vmul.f32 -1.442695, %v2791_v8 }
 0x566   :  { %2865 = vpow2.f32 %v1778_v7 }
 0x567   :  { %2867 = vpow2.f32 %v1779_v12 }
 0x570   :  { %v2866_v14 = vpop.eup %2865 }
 0x571   :  { %v1240_v16 = vadd.f32 1.0, %v2866_v14  ;;  %v2868_v50 = vpop.eup %2867 }
 0x572   :  { %v1247_v30 = vadd.f32 1.0, %v2868_v50 }
 0x573   :  { %2869 = vrcp.f32 %v1240_v16 }
 0x57d   :  { %v2870_v21 = vpop.eup %2869 }
 0x57e   :  { %v1251_v22 = vmul.f32 %v2870_v21, %v1250_v19 }
 0x580   :  { %v1252_v28 = vadd.f32 %v1251_v22, %v3227_v57 }
 0x582   :  { %2871 = vtanh.f32 %v1252_v28 }
 0x583   :  { %2873 = vrcp.f32 %v1247_v30 }
 0x58c   :  { %v2872_v31 = vpop.eup %2871 }
 0x58d   :  { %v1254_v33 = vsub.f32 %v1091_v60, %v2872_v31  ;;  %v2874_v36 = vpop.eup %2873 }
 0x58f   :  { %v1255_v43 = vmul.f32 %v2874_v36, %v1254_v33 }
 0x591   :  { %v1256_v37 = vadd.f32 %v2872_v31, %v1255_v43 }
 0x593   :  { %1325 = vmatmul.mubr.f32.vlgmr.msra.gmra.mrb[10].mxu0 %v1256_v37  ;;  %2198 = vmatmul.mubr.f32.vlgmr.msra.gmra.mrb[18].mxu1 %v1256_v37 }
 0x594   :  { %2673 = vmatpush1.bf16.msra.mxu0 %v3088_v17  ;;  %2704 = vmatpush3.bf16.msra.mxu1 %v3109_v41 }
 0x595   :  { %2675 = vmatprep.subr.bf16.mxu0 %v3091_v18  ;;  %2705 = vmatprep.subr.bf16.mxu1 %v3007_v40 }
 0x596   :  { %1489 = vmatprep.mubr.f32.mxu0 %v3006_v0  ;;  %2232 = vmatprep.mubr.msk.f32.mxu1 %vm3008_vm0, %v3006_v0 }
 0x598   :  { %2677 = vmatpush1.bf16.msra.mxu0 %v3096_v25  ;;  %2707 = vmatpush3.bf16.msra.mxu1 %v3119_v51 }
 0x599   :  { %2679 = vmatprep.subr.bf16.mxu0 %v3099_v26  ;;  %2708 = vmatprep.subr.bf16.mxu1 %v3007_v40 }
 0x59c   :  { %2681 = vmatpush1.bf16.msra.mxu0 %v3103_v34  ;;  %2710 = vmatpush3.bf16.msra.mxu1 %v3130_v61 }
 0x59d   :  { %2683 = vmatprep.subr.bf16.mxu0 %v3106_v35  ;;  %2711 = vmatprep.subr.bf16.mxu1 %v3007_v40 }
 0x5a0   :  { %2685 = vmatpush1.bf16.msra.mxu0 %v3113_v45  ;;  %2713 = vmatpush3.bf16.msra.mxu1 %v3141_v10 }
 0x5a1   :  { %2687 = vmatprep.subr.bf16.mxu0 %v3116_v46  ;;  %2714 = vmatprep.subr.bf16.mxu1 %v3007_v40 }
 0x5a4   :  { %2689 = vmatpush1.bf16.msra.mxu0 %v3124_v55  ;;  %2716 = vmatpush3.bf16.msra.mxu1 %v3152_v20 }
 0x5a5   :  { %2691 = vmatprep.subr.bf16.mxu0 %v3127_v56  ;;  %2717 = vmatprep.subr.bf16.mxu1 %v3007_v40 }
 0x5a8   :  { %2693 = vmatpush1.bf16.msra.mxu0 %v3135_v2  ;;  %2719 = vmatpush3.bf16.msra.mxu1 %v3163_v24 }
 0x5a9   :  { %2695 = vmatprep.subr.bf16.mxu0 %v3138_v4  ;;  %2720 = vmatprep.subr.bf16.mxu1 %v3007_v40 }
 0x5ac   :  { %2697 = vmatpush1.bf16.msra.mxu0 %v3146_v13  ;;  %2722 = vmatpush3.bf16.msra.mxu1 %v3170_v29 }
 0x5ad   :  { %2699 = vmatprep.subr.bf16.mxu0 %v3149_v15  ;;  %2723 = vmatprep.subr.bf16.mxu1 %v3007_v40 }
 0x5b0   :  { %2701 = vmatpush1.bf16.msra.mxu0 %v3159_v23  ;;  %2725 = vmatpush3.bf16.msra.mxu1 %v3178_v32 }
 0x5b1   :  { %2727 = vmatprep.subr.bf16.mxu0 %v3086_v9  ;;  %2758 = vmatprep.subr.bf16.mxu1 %v3007_v40 }
 0x666   :  { %v1326_v57 = vpop.f32.mrb[10].mxu0  ;;  %v1397_v38 = vpop.f32.mrb[18].mxu1 }
 0x667   :  { %v2792_v42 = vadd.f32 %v1326_v57, %v3233_v1  ;;  %v1328_v47 = vpop.f32.mrb[11].mxu0  ;;  %v2199_v49 = vpop.f32.mrb[19].mxu1  ;;  %v1415_v9 = vadd.f32 %v3242_v27, %v1397_v38 }
 0x668   :  { %v2793_v54 = vadd.f32 %v1328_v47, %v3236_v11 }
 0x669   :  { %v1780_v52 = vmul.f32 -1.442695, %v2792_v42 }
 0x66a   :  { %v1781_v39 = vmul.f32 -1.442695, %v2793_v54 }
 0x66b   :  { %2875 = vpow2.f32 %v1780_v52 }
 0x66c   :  { %2877 = vpow2.f32 %v1781_v39 }
 0x675   :  { %v2876_v44 = vpop.eup %2875 }
 0x676   :  { %v1405_v58 = vadd.f32 1.0, %v2876_v44  ;;  %v2878_v60 = vpop.eup %2877 }
 0x677   :  { %v1412_v5 = vadd.f32 1.0, %v2878_v60 }
 0x678   :  { %2879 = vrcp.f32 %v1405_v58 }
 0x682   :  { %v2880_v48 = vpop.eup %2879 }
 0x683   :  { %v1416_v63 = vmul.f32 %v2880_v48, %v1415_v9 }
 0x685   :  { %v1417_v3 = vadd.f32 %v1416_v63, %v3225_v53 }
 0x687   :  { %2881 = vtanh.f32 %v1417_v3 }
 0x688   :  { %2883 = vrcp.f32 %v1412_v5 }
 0x691   :  { %v2882_v6 = vpop.eup %2881 }
 0x692   :  { %v1419_v7 = vsub.f32 %v1256_v37, %v2882_v6  ;;  %v2884_v8 = vpop.eup %2883 }
 0x694   :  { %v1420_v12 = vmul.f32 %v2884_v8, %v1419_v7 }
 0x696   :  { %v1421_v14 = vadd.f32 %v2882_v6, %v1420_v12 }
 0x698   :  { %1490 = vmatmul.mubr.f32.vlgmr.msra.gmra.mrb[12].mxu0 %v1421_v14  ;;  %2233 = vmatmul.mubr.f32.vlgmr.msra.gmra.mrb[20].mxu1 %v1421_v14 }
 0x699   :  { %2729 = vmatpush1.bf16.msra.mxu0 %v3088_v17  ;;  %2760 = vmatpush3.bf16.msra.mxu1 %v3109_v41 }
 0x69a   :  { %2731 = vmatprep.subr.bf16.mxu0 %v3091_v18  ;;  %2761 = vmatprep.subr.bf16.mxu1 %v3007_v40 }
 0x69b   :  { %1654 = vmatprep.mubr.f32.mxu0 %v3006_v0  ;;  %2267 = vmatprep.mubr.msk.f32.mxu1 %vm3008_vm0, %v3006_v0 }
 0x69d   :  { %2733 = vmatpush1.bf16.msra.mxu0 %v3096_v25  ;;  %2763 = vmatpush3.bf16.msra.mxu1 %v3119_v51 }
 0x69e   :  { %2735 = vmatprep.subr.bf16.mxu0 %v3099_v26  ;;  %2764 = vmatprep.subr.bf16.mxu1 %v3007_v40 }
 0x6a1   :  { %2737 = vmatpush1.bf16.msra.mxu0 %v3103_v34  ;;  %2766 = vmatpush3.bf16.msra.mxu1 %v3130_v61 }
 0x6a2   :  { %2739 = vmatprep.subr.bf16.mxu0 %v3106_v35  ;;  %2767 = vmatprep.subr.bf16.mxu1 %v3007_v40 }
 0x6a5   :  { %2741 = vmatpush1.bf16.msra.mxu0 %v3113_v45  ;;  %2769 = vmatpush3.bf16.msra.mxu1 %v3141_v10 }
 0x6a6   :  { %2743 = vmatprep.subr.bf16.mxu0 %v3116_v46  ;;  %2770 = vmatprep.subr.bf16.mxu1 %v3007_v40 }
 0x6a9   :  { %2745 = vmatpush1.bf16.msra.mxu0 %v3124_v55  ;;  %2772 = vmatpush3.bf16.msra.mxu1 %v3152_v20 }
 0x6aa   :  { %2747 = vmatprep.subr.bf16.mxu0 %v3127_v56  ;;  %2773 = vmatprep.subr.bf16.mxu1 %v3007_v40 }
 0x6ad   :  { %2749 = vmatpush1.bf16.msra.mxu0 %v3135_v2  ;;  %2775 = vmatpush3.bf16.msra.mxu1 %v3163_v24 }
 0x6ae   :  { %2751 = vmatprep.subr.bf16.mxu0 %v3138_v4  ;;  %2776 = vmatprep.subr.bf16.mxu1 %v3007_v40 }
 0x6b1   :  { %2753 = vmatpush1.bf16.msra.mxu0 %v3146_v13  ;;  %2778 = vmatpush3.bf16.msra.mxu1 %v3170_v29 }
 0x6b2   :  { %2755 = vmatprep.subr.bf16.mxu0 %v3149_v15  ;;  %2779 = vmatprep.subr.bf16.mxu1 %v3007_v40 }
 0x6b5   :  { %2757 = vmatpush1.bf16.msra.mxu0 %v3159_v23  ;;  %2781 = vmatpush3.bf16.msra.mxu1 %v3178_v32 }
 0x76b   :  { %v1491_v0 = vpop.f32.mrb[12].mxu0  ;;  %v1562_v17 = vpop.f32.mrb[20].mxu1 }
 0x76c   :  { %v2794_v18 = vadd.f32 %v1491_v0, %v3233_v1  ;;  %v1493_v25 = vpop.f32.mrb[13].mxu0  ;;  %v2234_v26 = vpop.f32.mrb[21].mxu1  ;;  %v1580_v51 = vadd.f32 %v3242_v27, %v1562_v17 }
 0x76d   :  { %v2795_v35 = vadd.f32 %v1493_v25, %v3236_v11 }
 0x76e   :  { %v1782_v34 = vmul.f32 -1.442695, %v2794_v18 }
 0x76f   :  { %v1783_v41 = vmul.f32 -1.442695, %v2795_v35 }
 0x770   :  { %2885 = vpow2.f32 %v1782_v34 }
 0x771   :  { %2887 = vpow2.f32 %v1783_v41 }
 0x77a   :  { %v2886_v45 = vpop.eup %2885 }
 0x77b   :  { %v1570_v46 = vadd.f32 1.0, %v2886_v45  ;;  %v2888_v40 = vpop.eup %2887 }
 0x77c   :  { %v1577_v2 = vadd.f32 1.0, %v2888_v40 }
 0x77d   :  { %2889 = vrcp.f32 %v1570_v46 }
 0x787   :  { %v2890_v55 = vpop.eup %2889 }
 0x788   :  { %v1581_v56 = vmul.f32 %v2890_v55, %v1580_v51 }
 0x78a   :  { %v1582_v61 = vadd.f32 %v1581_v56, %v3231_v62 }
 0x78c   :  { %2891 = vtanh.f32 %v1582_v61 }
 0x78d   :  { %2893 = vrcp.f32 %v1577_v2 }
 0x796   :  { %v2892_v4 = vpop.eup %2891 }
 0x797   :  { %v1584_v10 = vsub.f32 %v1421_v14, %v2892_v4  ;;  %v2894_v13 = vpop.eup %2893 }
 0x799   :  { %v1585_v15 = vmul.f32 %v2894_v13, %v1584_v10 }
 0x79b   :  { %v1586_v20 = vadd.f32 %v2892_v4, %v1585_v15 }
 0x79d   :  { %1655 = vmatmul.mubr.f32.vlgmr.msra.gmra.mrb[14].mxu0 %v1586_v20  ;;  %2268 = vmatmul.mubr.f32.vlgmr.msra.gmra.mrb[22].mxu1 %v1586_v20 }
 0x870   :  { %v1656_v23 = vpop.f32.mrb[14].mxu0  ;;  %v1727_v24 = vpop.f32.mrb[22].mxu1 }
 0x871   :  { %v2796_v29 = vadd.f32 %v1656_v23, %v3233_v1  ;;  %v1658_v32 = vpop.f32.mrb[15].mxu0  ;;  %v2269_v53 = vpop.f32.mrb[23].mxu1  ;;  %v1745_v28 = vadd.f32 %v3242_v27, %v1727_v24 }
 0x872   :  { %v2797_v62 = vadd.f32 %v1658_v32, %v3236_v11 }
 0x873   :  { %v1784_v16 = vmul.f32 -1.442695, %v2796_v29 }
 0x874   :  { %v1785_v50 = vmul.f32 -1.442695, %v2797_v62 }
 0x875   :  { %2895 = vpow2.f32 %v1784_v16 }
 0x876   :  { %2897 = vpow2.f32 %v1785_v50 }
 0x87f   :  { %v2896_v19 = vpop.eup %2895 }
 0x880   :  { %v1735_v21 = vadd.f32 1.0, %v2896_v19  ;;  %v2898_v22 = vpop.eup %2897 }
 0x881   :  { %v1742_v36 = vadd.f32 1.0, %v2898_v22 }
 0x882   :  { %2899 = vrcp.f32 %v1735_v21 }
 0x88c   :  { %v2900_v30 = vpop.eup %2899 }
 0x88d   :  { %v1746_v31 = vmul.f32 %v2900_v30, %v1745_v28 }
 0x88f   :  { %v1747_v33 = vadd.f32 %v1746_v31, %v3229_v59 }
 0x891   :  { %2901 = vtanh.f32 %v1747_v33 }
 0x892   :  { %2903 = vrcp.f32 %v1742_v36 }
 0x89b   :  { %v2902_v1 = vpop.eup %2901 }
 0x89c   :  { %v1749_v43 = vsub.f32 %v1586_v20, %v2902_v1  ;;  %v2904_v37 = vpop.eup %2903 }
 0x89e   :  { %v1750_v11 = vmul.f32 %v2904_v37, %v1749_v43 }
 0x8a0   :  { %v1751_v57 = vadd.f32 %v2902_v1, %v1750_v11 }
 0x8a2   :  { %1752 = vst [vmem:[#allocation9] sm:$0xff] %v1751_v57 }
 0x8a3   :  { %2982 = shalt.err (!%p2979_p0)
}
 0x8a4   :  { %s2983_s12 = scalar_lea.hbm %s3498_s5, 128 }
 0x8a5   :  { %p2984_p1 = scmp.ne.s32.totalorder %s3498_s5, %s2983_s12  ;;  %p2987_p2 = scmp.lt.u32.totalorder %s2983_s12, %s3498_s5 }
 0x8a7   :  { %p2989_p3 = pnand %p2987_p2, %p2984_p1 }
 0x8a9   :  { %2992 = shalt.err (!%p2989_p3)
}
 0x8aa   :  { %1762 = dma.vmem_to_hbm [thread:$0]  %s1760_s8, 128, %s3498_s5, [#allocation5]  }
 0x8ab   :  { %2997 = dma.done.wait [#allocation5], 128  }
 0x8ac   :  { %2998 = vsyncadd [#allocation5], 4294967168 }
 0x8ad   :  { %1766 = vsyncpa [#allocation4], 1 }
 0x8ae   :  { %1767 = vsyncpa [#allocation7], 1 }
 0x8af   :  { %1768 = vsyncpa [#allocation5], 1 }

</bundles_post_ra>
